<compile_context>
chip_gen: v7x
topology: tpu7x:2x2x1
jax: 0.10.0
libtpu: 0.0.40
codegen_flags: <defaults>
</compile_context>

<pallas_src>
import functools

import jax
import jax.numpy as jnp
from jax.experimental import pallas as pl
from jax.experimental.pallas import tpu as pltpu

IN_DIM, H1, H2, OUT_DIM = 784, 512, 256, 1
IN_PAD = 896    # 7 * 128  (lane-multiple K for layer 1)
OUT_PAD = 128   # lane-dense output tile; real output is column 0
TB = 128        # batch tile (multiple of 128 -> clean MXU mapping on v5e/v6e/v7x)


def _leaky_relu(x, slope=0.2):
    return jnp.where(x > 0, x, slope * x)


def discriminator_kernel(x_ref, w1_ref, b1_ref, w2_ref, b2_ref, w3_ref, b3_ref,
                         o_ref):
    # Fully fused 3-layer MLP on one (TB, IN_PAD) batch tile.
    # Matmul operands bf16, accumulate f32 (preferred_element_type), elementwise f32.
    h = jnp.dot(x_ref[...], w1_ref[...],
                preferred_element_type=jnp.float32)              # (TB, 512) f32
    h = _leaky_relu(h + b1_ref[...])
    h = jnp.dot(h.astype(jnp.bfloat16), w2_ref[...],
                preferred_element_type=jnp.float32)              # (TB, 256) f32
    h = _leaky_relu(h + b2_ref[...])
    h = jnp.dot(h.astype(jnp.bfloat16), w3_ref[...],
                preferred_element_type=jnp.float32)              # (TB, 128) f32
    h = h + b3_ref[...]
    o_ref[...] = jax.nn.sigmoid(h).astype(o_ref.dtype)


@functools.partial(jax.jit)
def discriminator_forward(x, w1, b1, w2, b2, w3, b3):
    B = x.shape[0]
    x2 = x.reshape(B, IN_DIM).astype(jnp.float32)

    # Pad batch to a TB multiple and K to a lane multiple (zeros are exact).
    b_pad = ((B + TB - 1) // TB) * TB
    x_p = jnp.pad(x2, ((0, b_pad - B), (0, IN_PAD - IN_DIM))).astype(jnp.bfloat16)

    # Weights: bf16 matmul operands; pad w1 rows (K) and w3/b3 columns (lanes).
    w1_p = jnp.pad(w1, ((0, IN_PAD - IN_DIM), (0, 0))).astype(jnp.bfloat16)
    w2_b = w2.astype(jnp.bfloat16)
    w3_p = jnp.pad(w3, ((0, 0), (0, OUT_PAD - OUT_DIM))).astype(jnp.bfloat16)
    b3_p = jnp.pad(b3, ((0, 0), (0, OUT_PAD - OUT_DIM)))        # f32

    bytes_accessed = (x_p.size * 2 + w1_p.size * 2 + w2_b.size * 2 + w3_p.size * 2
                      + (H1 + H2 + OUT_PAD) * 4 + b_pad * OUT_PAD * 4)

    out = pl.pallas_call(
        discriminator_kernel,
        out_shape=jax.ShapeDtypeStruct((b_pad, OUT_PAD), jnp.float32),
        grid_spec=pltpu.PrefetchScalarGridSpec(
            num_scalar_prefetch=0,
            grid=(b_pad // TB,),
            in_specs=[
                pl.BlockSpec((TB, IN_PAD), lambda i: (i, 0)),
                pl.BlockSpec((IN_PAD, H1), lambda i: (0, 0)),
                pl.BlockSpec((1, H1), lambda i: (0, 0)),
                pl.BlockSpec((H1, H2), lambda i: (0, 0)),
                pl.BlockSpec((1, H2), lambda i: (0, 0)),
                pl.BlockSpec((H2, OUT_PAD), lambda i: (0, 0)),
                pl.BlockSpec((1, OUT_PAD), lambda i: (0, 0)),
            ],
            out_specs=pl.BlockSpec((TB, OUT_PAD), lambda i: (i, 0)),
        ),
        compiler_params=pltpu.CompilerParams(
            dimension_semantics=("parallel",)),   # batch axis shards across TCs on v7x
        cost_estimate=pl.CostEstimate(
            flops=2 * b_pad * (IN_PAD * H1 + H1 * H2 + H2 * OUT_PAD),
            transcendentals=b_pad * OUT_PAD,
            bytes_accessed=bytes_accessed),
    )(x_p, w1_p, b1, w2_b, b2, w3_p, b3_p)

    return out[:B, :OUT_DIM]


def init_params(key):
    """Deterministic init mimicking nn.Linear default: U(-1/sqrt(fan_in), +)."""
    ks = jax.random.split(key, 6)

    def lin(kw, kb, fan_in, fan_out):
        bound = 1.0 / jnp.sqrt(fan_in)
        w = jax.random.uniform(kw, (fan_in, fan_out), jnp.float32, -bound, bound)
        b = jax.random.uniform(kb, (1, fan_out), jnp.float32, -bound, bound)
        return w, b

    w1, b1 = lin(ks[0], ks[1], IN_DIM, H1)
    w2, b2 = lin(ks[2], ks[3], H1, H2)
    w3, b3 = lin(ks[4], ks[5], H2, OUT_DIM)
    return w1, b1, w2, b2, w3, b3


def reference_forward(x, w1, b1, w2, b2, w3, b3):
    # Pure f32 reference (matches the PyTorch module's math).
    h = x.reshape(x.shape[0], IN_DIM).astype(jnp.float32)
    h = _leaky_relu(h @ w1 + b1)
    h = _leaky_relu(h @ w2 + b2)
    return jax.nn.sigmoid(h @ w3 + b3)


if __name__ == "__main__":
    key = jax.random.PRNGKey(0)
    k_params, k_x = jax.random.split(key)
    params = init_params(k_params)

    # MNIST-style NCHW input, small batch.
    x = jax.random.normal(k_x, (2, 1, 28, 28), dtype=jnp.float32)

    out = discriminator_forward(x, *params)
    out = jax.block_until_ready(out)

    ref = reference_forward(x, *params)
    assert out.shape == (2, 1), out.shape
    # bf16 matmul operands (f32 accumulate) -> loosened tolerance vs f32 reference.
    assert jnp.allclose(out, ref, atol=2e-2, rtol=2e-2), "mismatch vs reference"

    print("KERNEL_OK")
</pallas_src>

<mosaic_0001>
module attributes {stable_mosaic.version = 11 : i64} {
  func.func @discriminator_kernel(%arg0: i32, %arg1: memref<128x896xbf16, #tpu.memory_space<vmem>>, %arg2: memref<896x512xbf16, #tpu.memory_space<vmem>>, %arg3: memref<1x512xf32, #tpu.memory_space<vmem>>, %arg4: memref<512x256xbf16, #tpu.memory_space<vmem>>, %arg5: memref<1x256xf32, #tpu.memory_space<vmem>>, %arg6: memref<256x128xbf16, #tpu.memory_space<vmem>>, %arg7: memref<1x128xf32, #tpu.memory_space<vmem>>, %arg8: memref<128x128xf32, #tpu.memory_space<vmem>>) attributes {dimension_semantics = [#tpu.dimension_semantics<parallel>], iteration_bounds = array<i64: 1>, scalar_prefetch = 0 : i64, scratch_operands = 0 : i64, tpu.core_type = #tpu.core_type<tc>, window_params = [{transform_indices = @transform_0, window_bounds = array<i64: 128, 896>}, {pipeline_mode = #tpu.pipeline_mode<synchronous>, transform_indices = @transform_1, window_bounds = array<i64: 896, 512>}, {pipeline_mode = #tpu.pipeline_mode<synchronous>, transform_indices = @transform_2, window_bounds = array<i64: 1, 512>}, {pipeline_mode = #tpu.pipeline_mode<synchronous>, transform_indices = @transform_3, window_bounds = array<i64: 512, 256>}, {pipeline_mode = #tpu.pipeline_mode<synchronous>, transform_indices = @transform_4, window_bounds = array<i64: 1, 256>}, {pipeline_mode = #tpu.pipeline_mode<synchronous>, transform_indices = @transform_5, window_bounds = array<i64: 256, 128>}, {pipeline_mode = #tpu.pipeline_mode<synchronous>, transform_indices = @transform_6, window_bounds = array<i64: 1, 128>}, {transform_indices = @transform_7, window_bounds = array<i64: 128, 128>}]} {
    %c0 = arith.constant 0 : index
    %c0_0 = arith.constant 0 : index
    %0 = vector.load %arg1[%c0, %c0_0] : memref<128x896xbf16, #tpu.memory_space<vmem>>, vector<128x896xbf16>
    %c0_1 = arith.constant 0 : index
    %c0_2 = arith.constant 0 : index
    %1 = vector.load %arg2[%c0_1, %c0_2] : memref<896x512xbf16, #tpu.memory_space<vmem>>, vector<896x512xbf16>
    %cst = arith.constant dense<0.000000e+00> : vector<128x512xf32>
    %2 = tpu.matmul %0, %1, %cst {dimension_numbers = #tpu.dot_dimension_numbers<[1], [0], [0], [1], [0, 0, 1, 1], [], []>} : vector<128x896xbf16>, vector<896x512xbf16>, vector<128x512xf32> -> vector<128x512xf32>
    %c0_3 = arith.constant 0 : index
    %c0_4 = arith.constant 0 : index
    %3 = vector.load %arg3[%c0_3, %c0_4] : memref<1x512xf32, #tpu.memory_space<vmem>>, vector<1x512xf32>
    %4 = vector.broadcast %3 : vector<1x512xf32> to vector<128x512xf32>
    %5 = arith.addf %2, %4 : vector<128x512xf32>
    %cst_5 = arith.constant 0.000000e+00 : f32
    %6 = vector.broadcast %cst_5 : f32 to vector<128x512xf32>
    %7 = arith.cmpf ogt, %5, %6 : vector<128x512xf32>
    %cst_6 = arith.constant 2.000000e-01 : f32
    %8 = vector.broadcast %cst_6 : f32 to vector<128x512xf32>
    %9 = arith.mulf %8, %5 : vector<128x512xf32>
    %10 = arith.select %7, %5, %9 : vector<128x512xi1>, vector<128x512xf32>
    %11 = arith.truncf %10 : vector<128x512xf32> to vector<128x512xbf16>
    %c0_7 = arith.constant 0 : index
    %c0_8 = arith.constant 0 : index
    %12 = vector.load %arg4[%c0_7, %c0_8] : memref<512x256xbf16, #tpu.memory_space<vmem>>, vector<512x256xbf16>
    %cst_9 = arith.constant dense<0.000000e+00> : vector<128x256xf32>
    %13 = tpu.matmul %11, %12, %cst_9 {dimension_numbers = #tpu.dot_dimension_numbers<[1], [0], [0], [1], [0, 0, 1, 1], [], []>} : vector<128x512xbf16>, vector<512x256xbf16>, vector<128x256xf32> -> vector<128x256xf32>
    %c0_10 = arith.constant 0 : index
    %c0_11 = arith.constant 0 : index
    %14 = vector.load %arg5[%c0_10, %c0_11] : memref<1x256xf32, #tpu.memory_space<vmem>>, vector<1x256xf32>
    %15 = vector.broadcast %14 : vector<1x256xf32> to vector<128x256xf32>
    %16 = arith.addf %13, %15 : vector<128x256xf32>
    %cst_12 = arith.constant 0.000000e+00 : f32
    %17 = vector.broadcast %cst_12 : f32 to vector<128x256xf32>
    %18 = arith.cmpf ogt, %16, %17 : vector<128x256xf32>
    %cst_13 = arith.constant 2.000000e-01 : f32
    %19 = vector.broadcast %cst_13 : f32 to vector<128x256xf32>
    %20 = arith.mulf %19, %16 : vector<128x256xf32>
    %21 = arith.select %18, %16, %20 : vector<128x256xi1>, vector<128x256xf32>
    %22 = arith.truncf %21 : vector<128x256xf32> to vector<128x256xbf16>
    %c0_14 = arith.constant 0 : index
    %c0_15 = arith.constant 0 : index
    %23 = vector.load %arg6[%c0_14, %c0_15] : memref<256x128xbf16, #tpu.memory_space<vmem>>, vector<256x128xbf16>
    %cst_16 = arith.constant dense<0.000000e+00> : vector<128x128xf32>
    %24 = tpu.matmul %22, %23, %cst_16 {dimension_numbers = #tpu.dot_dimension_numbers<[1], [0], [0], [1], [0, 0, 1, 1], [], []>} : vector<128x256xbf16>, vector<256x128xbf16>, vector<128x128xf32> -> vector<128x128xf32>
    %c0_17 = arith.constant 0 : index
    %c0_18 = arith.constant 0 : index
    %25 = vector.load %arg7[%c0_17, %c0_18] : memref<1x128xf32, #tpu.memory_space<vmem>>, vector<1x128xf32>
    %26 = vector.broadcast %25 : vector<1x128xf32> to vector<128x128xf32>
    %27 = arith.addf %24, %26 : vector<128x128xf32>
    %28 = arith.negf %27 : vector<128x128xf32>
    %29 = math.exp %28 : vector<128x128xf32>
    %cst_19 = arith.constant 1.000000e+00 : f32
    %30 = vector.broadcast %cst_19 : f32 to vector<128x128xf32>
    %31 = arith.addf %30, %29 : vector<128x128xf32>
    %32 = arith.divf %30, %31 : vector<128x128xf32>
    %c0_20 = arith.constant 0 : index
    %c0_21 = arith.constant 0 : index
    %33 = vector.load %arg8[%c0_20, %c0_21] : memref<128x128xf32, #tpu.memory_space<vmem>>, vector<128x128xf32>
    tpu.vector_store %arg8[%c0_20, %c0_21], %32 {strides = array<i32>} : memref<128x128xf32, #tpu.memory_space<vmem>>, vector<128x128xf32>,
    return
  }
  func.func @transform_0(%arg0: i32) -> (i32, i32) {
    %c0_i32 = arith.constant 0 : i32
    %c0_i32_0 = arith.constant 0 : i32
    return %arg0, %c0_i32 : i32, i32
  }
  func.func @transform_1(%arg0: i32) -> (i32, i32) {
    %c0_i32 = arith.constant 0 : i32
    %c0_i32_0 = arith.constant 0 : i32
    %c0_i32_1 = arith.constant 0 : i32
    return %c0_i32, %c0_i32_0 : i32, i32
  }
  func.func @transform_2(%arg0: i32) -> (i32, i32) {
    %c0_i32 = arith.constant 0 : i32
    %c0_i32_0 = arith.constant 0 : i32
    %c0_i32_1 = arith.constant 0 : i32
    return %c0_i32, %c0_i32_0 : i32, i32
  }
  func.func @transform_3(%arg0: i32) -> (i32, i32) {
    %c0_i32 = arith.constant 0 : i32
    %c0_i32_0 = arith.constant 0 : i32
    %c0_i32_1 = arith.constant 0 : i32
    return %c0_i32, %c0_i32_0 : i32, i32
  }
  func.func @transform_4(%arg0: i32) -> (i32, i32) {
    %c0_i32 = arith.constant 0 : i32
    %c0_i32_0 = arith.constant 0 : i32
    %c0_i32_1 = arith.constant 0 : i32
    return %c0_i32, %c0_i32_0 : i32, i32
  }
  func.func @transform_5(%arg0: i32) -> (i32, i32) {
    %c0_i32 = arith.constant 0 : i32
    %c0_i32_0 = arith.constant 0 : i32
    %c0_i32_1 = arith.constant 0 : i32
    return %c0_i32, %c0_i32_0 : i32, i32
  }
  func.func @transform_6(%arg0: i32) -> (i32, i32) {
    %c0_i32 = arith.constant 0 : i32
    %c0_i32_0 = arith.constant 0 : i32
    %c0_i32_1 = arith.constant 0 : i32
    return %c0_i32, %c0_i32_0 : i32, i32
  }
  func.func @transform_7(%arg0: i32) -> (i32, i32) {
    %c0_i32 = arith.constant 0 : i32
    %c0_i32_0 = arith.constant 0 : i32
    return %arg0, %c0_i32 : i32, i32
  }
}

</mosaic_0001>

<bundles_post_ra>
// kernel: discriminator_forward.1
= control target key start
LH: loop header
LB: loop body
LE: loop exit
PB: predicated region body
PF: predicated region fallthrough
CT: control target
= control target key end

     0   :  { %v5333_v1 = vmov 0   ;;  %s7036_s1 = inlined_call_operand.vmem [shape: bf16[896,512], index: 1, kind: input, shape index: {}]   ;;  %s7037_s0 = inlined_call_operand.vmem [shape: bf16[128,896], index: 0, kind: input, shape index: {}]   ;;  %s7038_s3 = inlined_call_operand.vmem [shape: bf16[512,256], index: 3, kind: input, shape index: {}]   ;;  %s7039_s2 = inlined_call_operand.vmem [shape: f32[1,512], index: 2, kind: input, shape index: {}]   ;;  %s7040_s5 = inlined_call_operand.vmem [shape: bf16[256,128], index: 5, kind: input, shape index: {}]   ;;  %s7041_s4 = inlined_call_operand.vmem [shape: f32[1,256], index: 4, kind: input, shape index: {}]   ;;  %s7042_s6 = inlined_call_operand.vmem [shape: f32[1,128], index: 6, kind: input, shape index: {}]   ;;  %s7043_s7 = inlined_call_operand.vmem [shape: f32[128,128], index: 7, kind: output, shape index: {}]  }
   0x1   :  { %v4733_v0 = vld [vmem:[%s7036_s1 + $0x4] ss:$16 sps:$4 sm:$0xff]   ;;  %2116 = vmatprep.mubr.bf16.mxu1 %v5333_v1  ;;  %v4737_v3 = vld [vmem:[%s7036_s1] ss:$16 sps:$4 sm:$0xff]   ;;  %v4786_v34 = vld [vmem:[%s7036_s1 + $0xc] ss:$16 sps:$4 sm:$0xff]  }
   0x2   :  { %v4735_v2 = vld [vmem:[%s7036_s1 + $0x604] ss:$16 sps:$4 sm:$0xff]   ;;  %1745 = vmatprep.subr.bf16.mxu0 %v4733_v0  ;;  %v4738_v4 = vld [vmem:[%s7036_s1 + $0x600] ss:$16 sps:$4 sm:$0xff]   ;;  %v4784_v36 = vld [vmem:[%s7036_s1 + $0x8] ss:$16 sps:$4 sm:$0xff]  }
   0x3   :  { %2084 = vmatprep.subr.bf16.mxu1 %v4735_v2  ;;  %v4739_v5 = vld [vmem:[%s7036_s1 + $0x24] ss:$16 sps:$4 sm:$0xff]   ;;  %1746 = vmatpush1.bf16.msra.mxu0 %v4737_v3  ;;  %v4743_v7 = vld [vmem:[%s7036_s1 + $0x20] ss:$16 sps:$4 sm:$0xff]   ;;  %v4792_v39 = vld [vmem:[%s7036_s1 + $0x2c] ss:$16 sps:$4 sm:$0xff]  }
   0x4   :  { %2085 = vmatpush1.bf16.msra.mxu1 %v4738_v4  ;;  %v4741_v6 = vld [vmem:[%s7036_s1 + $0x624] ss:$16 sps:$4 sm:$0xff]   ;;  %1747 = vmatprep.subr.bf16.mxu0 %v4739_v5  ;;  %v4744_v8 = vld [vmem:[%s7036_s1 + $0x620] ss:$16 sps:$4 sm:$0xff]   ;;  %v4790_v40 = vld [vmem:[%s7036_s1 + $0x28] ss:$16 sps:$4 sm:$0xff]  }
   0x5   :  { %2086 = vmatprep.subr.bf16.mxu1 %v4741_v6  ;;  %v4745_v9 = vld [vmem:[%s7036_s1 + $0x44] ss:$16 sps:$4 sm:$0xff]   ;;  %v4749_v11 = vld [vmem:[%s7036_s1 + $0x40] ss:$16 sps:$4 sm:$0xff]   ;;  %v4799_v43 = vld [vmem:[%s7036_s1 + $0x4c] ss:$16 sps:$4 sm:$0xff]  }
   0x6   :  { %v4747_v10 = vld [vmem:[%s7036_s1 + $0x644] ss:$16 sps:$4 sm:$0xff]   ;;  %v4750_v12 = vld [vmem:[%s7036_s1 + $0x640] ss:$16 sps:$4 sm:$0xff]   ;;  %v4797_v45 = vld [vmem:[%s7036_s1 + $0x48] ss:$16 sps:$4 sm:$0xff]  }
   0x7   :  { %1748 = vmatpush1.bf16.msra.mxu0 %v4743_v7  ;;  %v4751_v13 = vld [vmem:[%s7036_s1 + $0x64] ss:$16 sps:$4 sm:$0xff]   ;;  %v4755_v15 = vld [vmem:[%s7036_s1 + $0x60] ss:$16 sps:$4 sm:$0xff]   ;;  %v4805_v48 = vld [vmem:[%s7036_s1 + $0x6c] ss:$16 sps:$4 sm:$0xff]  }
   0x8   :  { %2087 = vmatpush1.bf16.msra.mxu1 %v4744_v8  ;;  %1749 = vmatprep.subr.bf16.mxu0 %v4745_v9  ;;  %v4753_v14 = vld [vmem:[%s7036_s1 + $0x664] ss:$16 sps:$4 sm:$0xff]   ;;  %v4756_v16 = vld [vmem:[%s7036_s1 + $0x660] ss:$16 sps:$4 sm:$0xff]   ;;  %v4803_v49 = vld [vmem:[%s7036_s1 + $0x68] ss:$16 sps:$4 sm:$0xff]  }
   0x9   :  { %2088 = vmatprep.subr.bf16.mxu1 %v4747_v10  ;;  %v4757_v17 = vld [vmem:[%s7036_s1 + $0x84] ss:$16 sps:$4 sm:$0xff]   ;;  %v4761_v19 = vld [vmem:[%s7036_s1 + $0x80] ss:$16 sps:$4 sm:$0xff]   ;;  %v4812_v52 = vld [vmem:[%s7036_s1 + $0x8c] ss:$16 sps:$4 sm:$0xff]  }
   0xa   :  { %v4759_v18 = vld [vmem:[%s7036_s1 + $0x684] ss:$16 sps:$4 sm:$0xff]   ;;  %v4762_v20 = vld [vmem:[%s7036_s1 + $0x680] ss:$16 sps:$4 sm:$0xff]   ;;  %v4810_v54 = vld [vmem:[%s7036_s1 + $0x88] ss:$16 sps:$4 sm:$0xff]  }
   0xb   :  { %1750 = vmatpush1.bf16.msra.mxu0 %v4749_v11  ;;  %v4763_v21 = vld [vmem:[%s7036_s1 + $0xa4] ss:$16 sps:$4 sm:$0xff]   ;;  %v4767_v23 = vld [vmem:[%s7036_s1 + $0xa0] ss:$16 sps:$4 sm:$0xff]   ;;  %v4818_v58 = vld [vmem:[%s7036_s1 + $0xac] ss:$16 sps:$4 sm:$0xff]  }
   0xc   :  { %2089 = vmatpush1.bf16.msra.mxu1 %v4750_v12  ;;  %1751 = vmatprep.subr.bf16.mxu0 %v4751_v13  ;;  %v4765_v22 = vld [vmem:[%s7036_s1 + $0x6a4] ss:$16 sps:$4 sm:$0xff]   ;;  %v4768_v24 = vld [vmem:[%s7036_s1 + $0x6a0] ss:$16 sps:$4 sm:$0xff]   ;;  %v4816_v59 = vld [vmem:[%s7036_s1 + $0xa8] ss:$16 sps:$4 sm:$0xff]  }
   0xd   :  { %2090 = vmatprep.subr.bf16.mxu1 %v4753_v14  ;;  %v4769_v25 = vld [vmem:[%s7036_s1 + $0xc4] ss:$16 sps:$4 sm:$0xff]   ;;  %v4773_v27 = vld [vmem:[%s7036_s1 + $0xc0] ss:$16 sps:$4 sm:$0xff]   ;;  %v4825_v62 = vld [vmem:[%s7036_s1 + $0xcc] ss:$16 sps:$4 sm:$0xff]  }
   0xe   :  { %v4771_v26 = vld [vmem:[%s7036_s1 + $0x6c4] ss:$16 sps:$4 sm:$0xff]   ;;  %v4774_v28 = vld [vmem:[%s7036_s1 + $0x6c0] ss:$16 sps:$4 sm:$0xff]   ;;  %v4823_v0 = vld [vmem:[%s7036_s1 + $0xc8] ss:$16 sps:$4 sm:$0xff]  }
   0xf   :  { %1752 = vmatpush1.bf16.msra.mxu0 %v4755_v15  ;;  %v4775_v29 = vld [vmem:[%s7036_s1 + $0xe4] ss:$16 sps:$4 sm:$0xff]   ;;  %v4779_v31 = vld [vmem:[%s7036_s1 + $0xe0] ss:$16 sps:$4 sm:$0xff]   ;;  %v4831_v4 = vld [vmem:[%s7036_s1 + $0xec] ss:$16 sps:$4 sm:$0xff]  }
  0x10   :  { %2091 = vmatpush1.bf16.msra.mxu1 %v4756_v16  ;;  %1753 = vmatprep.subr.bf16.mxu0 %v4757_v17  ;;  %v4777_v30 = vld [vmem:[%s7036_s1 + $0x6e4] ss:$16 sps:$4 sm:$0xff]   ;;  %v4780_v32 = vld [vmem:[%s7036_s1 + $0x6e0] ss:$16 sps:$4 sm:$0xff]   ;;  %v4829_v5 = vld [vmem:[%s7036_s1 + $0xe8] ss:$16 sps:$4 sm:$0xff]  }
  0x11   :  { %2092 = vmatprep.subr.bf16.mxu1 %v4759_v18  ;;  %v4781_v33 = vld [vmem:[%s7036_s1 + $0x104] ss:$16 sps:$4 sm:$0xff]   ;;  %v4787_v37 = vld [vmem:[%s7036_s1 + $0x100] ss:$16 sps:$4 sm:$0xff]   ;;  %v4842_v9 = vld [vmem:[%s7036_s1 + $0x10c] ss:$16 sps:$4 sm:$0xff]  }
  0x12   :  { %v4783_v35 = vld [vmem:[%s7037_s0 + $0x18] ss:$28 sps:$4 sm:$0xff]   ;;  %v4793_v41 = vld [vmem:[%s7036_s1 + $0x120] ss:$16 sps:$4 sm:$0xff]   ;;  %v4809_v53 = vld [vmem:[%s7037_s0 + $0x88] ss:$28 sps:$4 sm:$0xff]  }
  0x13   :  { %1754 = vmatpush1.bf16.msra.mxu0 %v4761_v19  ;;  %v4788_v38 = vld [vmem:[%s7036_s1 + $0x124] ss:$16 sps:$4 sm:$0xff]   ;;  %v4796_v44 = vld [vmem:[%s7037_s0 + $0x50] ss:$28 sps:$4 sm:$0xff]   ;;  %v4822_v63 = vld [vmem:[%s7037_s0 + $0xc0] ss:$28 sps:$4 sm:$0xff]  }
  0x14   :  { %2093 = vmatpush1.bf16.msra.mxu1 %v4762_v20  ;;  %1755 = vmatprep.subr.bf16.mxu0 %v4763_v21  ;;  %v4794_v42 = vld [vmem:[%s7036_s1 + $0x144] ss:$16 sps:$4 sm:$0xff]   ;;  %v4800_v46 = vld [vmem:[%s7036_s1 + $0x140] ss:$16 sps:$4 sm:$0xff]   ;;  %v4840_v12 = vld [vmem:[%s7036_s1 + $0x108] ss:$16 sps:$4 sm:$0xff]  }
  0x15   :  { %2094 = vmatprep.subr.bf16.mxu1 %v4765_v22  ;;  %v4801_v47 = vld [vmem:[%s7036_s1 + $0x164] ss:$16 sps:$4 sm:$0xff]   ;;  %v4806_v50 = vld [vmem:[%s7036_s1 + $0x160] ss:$16 sps:$4 sm:$0xff]   ;;  %v4848_v14 = vld [vmem:[%s7036_s1 + $0x12c] ss:$16 sps:$4 sm:$0xff]  }
  0x16   :  { %v4807_v51 = vld [vmem:[%s7036_s1 + $0x184] ss:$16 sps:$4 sm:$0xff]   ;;  %v4813_v55 = vld [vmem:[%s7036_s1 + $0x180] ss:$16 sps:$4 sm:$0xff]   ;;  %v5618_v15 = vld [vmem:[%s7037_s0 + $0x3c] ss:$28 sps:$4 sm:$0xff]  }
  0x17   :  { %1756 = vmatpush1.bf16.msra.mxu0 %v4767_v23  ;;  %v5545_v56 = vld [vmem:[%s7037_s0 + $0x4] ss:$28 sps:$4 sm:$0xff]   ;;  %v4839_v11 = vld [vmem:[%s7037_s0 + $0xf8] ss:$28 sps:$4 sm:$0xff]   ;;  %v4858_v20 = vld [vmem:[%s7036_s1 + $0x14c] ss:$16 sps:$4 sm:$0xff]  }
  0x18   :  { %2095 = vmatpush1.bf16.msra.mxu1 %v4768_v24  ;;  %1757 = vmatprep.subr.bf16.mxu0 %v4769_v25  ;;  %v4814_v57 = vld [vmem:[%s7036_s1 + $0x1a4] ss:$16 sps:$4 sm:$0xff]   ;;  %v4819_v60 = vld [vmem:[%s7036_s1 + $0x1a0] ss:$16 sps:$4 sm:$0xff]   ;;  %v4846_v17 = vld [vmem:[%s7036_s1 + $0x128] ss:$16 sps:$4 sm:$0xff]  }
  0x19   :  { %2096 = vmatprep.subr.bf16.mxu1 %v4771_v26  ;;  %1777 = vmatprep.mubr.bf16.mxu0 %v5545_v56  ;;  %v4820_v61 = vld [vmem:[%s7036_s1 + $0x1c4] ss:$16 sps:$4 sm:$0xff]   ;;  %v4826_v2 = vld [vmem:[%s7036_s1 + $0x1c0] ss:$16 sps:$4 sm:$0xff]   ;;  %v4856_v23 = vld [vmem:[%s7036_s1 + $0x148] ss:$16 sps:$4 sm:$0xff]  }
  0x1a   :  { %v4827_v3 = vld [vmem:[%s7036_s1 + $0x1e4] ss:$16 sps:$4 sm:$0xff]   ;;  %v4832_v6 = vld [vmem:[%s7036_s1 + $0x1e0] ss:$16 sps:$4 sm:$0xff]   ;;  %v4864_v25 = vld [vmem:[%s7036_s1 + $0x16c] ss:$16 sps:$4 sm:$0xff]  }
  0x1b   :  { %1758 = vmatpush1.bf16.msra.mxu0 %v4773_v27  ;;  %v5591_v7 = vld [vmem:[%s7037_s0] ss:$28 sps:$4 sm:$0xff]   ;;  %v4838_v8 = vld [vmem:[%s7036_s1 + $0x204] ss:$16 sps:$4 sm:$0xff]   ;;  %v4855_v22 = vld [vmem:[%s7037_s0 + $0x130] ss:$28 sps:$4 sm:$0xff]  }
  0x1c   :  { %2097 = vmatpush1.bf16.msra.mxu1 %v4774_v28  ;;  %1759 = vmatprep.subr.bf16.mxu0 %v4775_v29  ;;  %v4836_v10 = vld [vmem:[%s7036_s1 + $0x200] ss:$16 sps:$4 sm:$0xff]   ;;  %v4845_v13 = vld [vmem:[%s7036_s1 + $0x224] ss:$16 sps:$4 sm:$0xff]   ;;  %v4862_v28 = vld [vmem:[%s7036_s1 + $0x168] ss:$16 sps:$4 sm:$0xff]  }
  0x1d   :  { %2098 = vmatprep.subr.bf16.mxu1 %v4777_v30  ;;  %v4843_v16 = vld [vmem:[%s7036_s1 + $0x220] ss:$16 sps:$4 sm:$0xff]   ;;  %v5630_v18 = vld [vmem:[%s7037_s0 + $0x38] ss:$28 sps:$4 sm:$0xff]   ;;  %v4874_v30 = vld [vmem:[%s7036_s1 + $0x18c] ss:$16 sps:$4 sm:$0xff]  }
  0x1e   :  { %v4854_v19 = vld [vmem:[%s7036_s1 + $0x244] ss:$16 sps:$4 sm:$0xff]   ;;  %v4852_v21 = vld [vmem:[%s7036_s1 + $0x240] ss:$16 sps:$4 sm:$0xff]  }
  0x1f   :  { %1760 = vmatpush1.bf16.msra.mxu0 %v4779_v31  ;;  %v4861_v24 = vld [vmem:[%s7036_s1 + $0x264] ss:$16 sps:$4 sm:$0xff]   ;;  %v4859_v27 = vld [vmem:[%s7036_s1 + $0x260] ss:$16 sps:$4 sm:$0xff]  }
  0x20   :  { %2099 = vmatpush1.bf16.msra.mxu1 %v4780_v32  ;;  %1761 = vmatprep.subr.bf16.mxu0 %v4781_v33  ;;  %v5658_v26 = vld [vmem:[%s7037_s0 + $0x74] ss:$28 sps:$4 sm:$0xff]   ;;  %v4871_v33 = vld [vmem:[%s7037_s0 + $0x168] ss:$28 sps:$4 sm:$0xff]  }
  0x21   :  { %2197 = vmatprep.subr.bf16.mxu1 %v4786_v34  ;;  %v4870_v29 = vld [vmem:[%s7036_s1 + $0x284] ss:$16 sps:$4 sm:$0xff]   ;;  %v5678_v31 = vld [vmem:[%s7037_s0 + $0x70] ss:$28 sps:$4 sm:$0xff]   ;;  %v4872_v34 = vld [vmem:[%s7036_s1 + $0x188] ss:$16 sps:$4 sm:$0xff]  }
  0x22   :  { %v4868_v32 = vld [vmem:[%s7036_s1 + $0x280] ss:$16 sps:$4 sm:$0xff]  }
  0x23   :  { %2117 = vmatmul.mubr.bf16.vlgmr.msra.gmra.mrb[0].mxu1 %v4783_v35  ;;  %1762 = vmatpush1.bf16.msra.mxu0 %v4787_v37  ;;  %v4877_v35 = vld [vmem:[%s7036_s1 + $0x2a4] ss:$16 sps:$4 sm:$0xff]   ;;  %v5698_v37 = vld [vmem:[%s7037_s0 + $0xac] ss:$28 sps:$4 sm:$0xff]  }
  0x24   :  { %2198 = vmatpush1.bf16.msra.mxu1 %v4784_v36  ;;  %1763 = vmatprep.subr.bf16.mxu0 %v4788_v38  ;;  %v4880_v36 = vld [vmem:[%s7036_s1 + $0x1ac] ss:$16 sps:$4 sm:$0xff]   ;;  %v4875_v38 = vld [vmem:[%s7036_s1 + $0x2a0] ss:$16 sps:$4 sm:$0xff]  }
  0x25   :  { %2199 = vmatprep.subr.bf16.mxu1 %v4792_v39  ;;  %2126 = vmatprep.mubr.bf16.mxu1 %v5333_v1  ;;  %v4878_v39 = vld [vmem:[%s7036_s1 + $0x1a8] ss:$16 sps:$4 sm:$0xff]  }
  0x27   :  { %1764 = vmatpush1.bf16.msra.mxu0 %v4793_v41  ;;  %v4890_v41 = vld [vmem:[%s7036_s1 + $0x1cc] ss:$16 sps:$4 sm:$0xff]  }
  0x28   :  { %2200 = vmatpush1.bf16.msra.mxu1 %v4790_v40  ;;  %1765 = vmatprep.subr.bf16.mxu0 %v4794_v42  ;;  %v4886_v40 = vld [vmem:[%s7036_s1 + $0x2c4] ss:$16 sps:$4 sm:$0xff]  }
  0x29   :  { %2201 = vmatprep.subr.bf16.mxu1 %v4799_v43  ;;  %v5718_v42 = vld [vmem:[%s7037_s0 + $0xa8] ss:$28 sps:$4 sm:$0xff]   ;;  %v4884_v43 = vld [vmem:[%s7036_s1 + $0x2c0] ss:$16 sps:$4 sm:$0xff]  }
  0x2b   :  { %2127 = vmatmul.mubr.bf16.gmra.mrb[4].mxu1 %v4796_v44  ;;  %1766 = vmatpush1.bf16.msra.mxu0 %v4800_v46  ;;  %v4887_v44 = vld [vmem:[%s7037_s0 + $0x1a0] ss:$28 sps:$4 sm:$0xff]   ;;  %v4893_v46 = vld [vmem:[%s7036_s1 + $0x2e4] ss:$16 sps:$4 sm:$0xff]  }
  0x2c   :  { %2202 = vmatpush1.bf16.msra.mxu1 %v4797_v45  ;;  %1767 = vmatprep.subr.bf16.mxu0 %v4801_v47  ;;  %v4888_v45 = vld [vmem:[%s7036_s1 + $0x1c8] ss:$16 sps:$4 sm:$0xff]   ;;  %v4896_v47 = vld [vmem:[%s7036_s1 + $0x1ec] ss:$16 sps:$4 sm:$0xff]  }
  0x2d   :  { %2203 = vmatprep.subr.bf16.mxu1 %v4805_v48  ;;  %2136 = vmatprep.mubr.bf16.mxu1 %v5333_v1  ;;  %v5738_v48 = vld [vmem:[%s7037_s0 + $0xe4] ss:$28 sps:$4 sm:$0xff]  }
  0x2f   :  { %1768 = vmatpush1.bf16.msra.mxu0 %v4806_v50  ;;  %v4894_v50 = vld [vmem:[%s7036_s1 + $0x1e8] ss:$16 sps:$4 sm:$0xff]  }
  0x30   :  { %2204 = vmatpush1.bf16.msra.mxu1 %v4803_v49  ;;  %1769 = vmatprep.subr.bf16.mxu0 %v4807_v51  ;;  %v4891_v49 = vld [vmem:[%s7036_s1 + $0x2e0] ss:$16 sps:$4 sm:$0xff]   ;;  %v4902_v51 = vld [vmem:[%s7036_s1 + $0x304] ss:$16 sps:$4 sm:$0xff]  }
  0x31   :  { %2205 = vmatprep.subr.bf16.mxu1 %v4812_v52  ;;  %v4905_v52 = vld [vmem:[%s7036_s1 + $0x20c] ss:$16 sps:$4 sm:$0xff]  }
  0x33   :  { %2137 = vmatmul.mubr.bf16.gmra.mrb[8].mxu1 %v4809_v53  ;;  %1770 = vmatpush1.bf16.msra.mxu0 %v4813_v55  ;;  %v5758_v53 = vld [vmem:[%s7037_s0 + $0xe0] ss:$28 sps:$4 sm:$0xff]   ;;  %v4903_v55 = vld [vmem:[%s7036_s1 + $0x208] ss:$16 sps:$4 sm:$0xff]  }
  0x34   :  { %2206 = vmatpush1.bf16.msra.mxu1 %v4810_v54  ;;  %1771 = vmatprep.subr.bf16.mxu0 %v4814_v57  ;;  %v4900_v54 = vld [vmem:[%s7036_s1 + $0x300] ss:$16 sps:$4 sm:$0xff]   ;;  %v4908_v57 = vld [vmem:[%s7036_s1 + $0x324] ss:$16 sps:$4 sm:$0xff]  }
  0x35   :  { %2207 = vmatprep.subr.bf16.mxu1 %v4818_v58  ;;  %2146 = vmatprep.mubr.bf16.mxu1 %v5333_v1  ;;  %v5775_v58 = vld [vmem:[%s7037_s0 + $0x11c] ss:$28 sps:$4 sm:$0xff]  }
  0x37   :  { %1772 = vmatpush1.bf16.msra.mxu0 %v4819_v60  ;;  %v4909_v60 = vld [vmem:[%s7036_s1 + $0x228] ss:$16 sps:$4 sm:$0xff]  }
  0x38   :  { %2208 = vmatpush1.bf16.msra.mxu1 %v4816_v59  ;;  %1773 = vmatprep.subr.bf16.mxu0 %v4820_v61  ;;  %v4906_v59 = vld [vmem:[%s7036_s1 + $0x320] ss:$16 sps:$4 sm:$0xff]   ;;  %v4917_v61 = vld [vmem:[%s7036_s1 + $0x344] ss:$16 sps:$4 sm:$0xff]  }
  0x39   :  { %2209 = vmatprep.subr.bf16.mxu1 %v4825_v62  ;;  %v4920_v62 = vld [vmem:[%s7036_s1 + $0x24c] ss:$16 sps:$4 sm:$0xff]  }
  0x3b   :  { %2147 = vmatmul.mubr.bf16.gmra.mrb[12].mxu1 %v4822_v63  ;;  %1774 = vmatpush1.bf16.msra.mxu0 %v4826_v2  ;;  %v5796_v63 = vld [vmem:[%s7037_s0 + $0x118] ss:$28 sps:$4 sm:$0xff]  }
  0x3c   :  { %2210 = vmatpush1.bf16.msra.mxu1 %v4823_v0  ;;  %1775 = vmatprep.subr.bf16.mxu0 %v4827_v3  ;;  %v4915_v0 = vld [vmem:[%s7036_s1 + $0x340] ss:$16 sps:$4 sm:$0xff]   ;;  %v4918_v2 = vld [vmem:[%s7036_s1 + $0x248] ss:$16 sps:$4 sm:$0xff]   ;;  %v4923_v3 = vld [vmem:[%s7036_s1 + $0x364] ss:$16 sps:$4 sm:$0xff]  }
  0x3d   :  { %2211 = vmatprep.subr.bf16.mxu1 %v4831_v4  ;;  %2156 = vmatprep.mubr.bf16.mxu1 %v5333_v1  ;;  %v4926_v4 = vld [vmem:[%s7036_s1 + $0x26c] ss:$16 sps:$4 sm:$0xff]  }
  0x3f   :  { %1776 = vmatpush1.bf16.msra.mxu0 %v4832_v6  ;;  %v4921_v6 = vld [vmem:[%s7036_s1 + $0x360] ss:$16 sps:$4 sm:$0xff]  }
  0x40   :  { %2212 = vmatpush1.bf16.msra.mxu1 %v4829_v5  ;;  %1858 = vmatprep.subr.bf16.mxu0 %v4838_v8  ;;  %v5813_v5 = vld [vmem:[%s7037_s0 + $0x154] ss:$28 sps:$4 sm:$0xff]  }
  0x41   :  { %2213 = vmatprep.subr.bf16.mxu1 %v4842_v9  ;;  %v4932_v8 = vld [vmem:[%s7036_s1 + $0x384] ss:$16 sps:$4 sm:$0xff]   ;;  %v4935_v9 = vld [vmem:[%s7036_s1 + $0x28c] ss:$16 sps:$4 sm:$0xff]  }
  0x42   :  { %1778 = vmatmul.mubr.bf16.vlgmr.msra.gmra.mrb[0].mxu0 %v5591_v7 }
  0x43   :  { %2157 = vmatmul.mubr.bf16.gmra.mrb[16].mxu1 %v4839_v11  ;;  %1859 = vmatpush1.bf16.msra.mxu0 %v4836_v10  ;;  %v5834_v10 = vld [vmem:[%s7037_s0 + $0x150] ss:$28 sps:$4 sm:$0xff]  }
  0x44   :  { %2214 = vmatpush1.bf16.msra.mxu1 %v4840_v12  ;;  %1860 = vmatprep.subr.bf16.mxu0 %v4845_v13  ;;  %v4930_v11 = vld [vmem:[%s7036_s1 + $0x380] ss:$16 sps:$4 sm:$0xff]   ;;  %v4933_v12 = vld [vmem:[%s7036_s1 + $0x288] ss:$16 sps:$4 sm:$0xff]   ;;  %v4938_v13 = vld [vmem:[%s7036_s1 + $0x3a4] ss:$16 sps:$4 sm:$0xff]  }
  0x45   :  { %2215 = vmatprep.subr.bf16.mxu1 %v4848_v14  ;;  %1787 = vmatprep.mubr.bf16.mxu0 %v5618_v15  ;;  %v4941_v14 = vld [vmem:[%s7036_s1 + $0x2ac] ss:$16 sps:$4 sm:$0xff]  }
  0x46   :  { %2166 = vmatprep.mubr.bf16.mxu1 %v5333_v1 }
  0x47   :  { %1861 = vmatpush1.bf16.msra.mxu0 %v4843_v16  ;;  %v4936_v16 = vld [vmem:[%s7036_s1 + $0x3a0] ss:$16 sps:$4 sm:$0xff]  }
  0x48   :  { %2216 = vmatpush1.bf16.msra.mxu1 %v4846_v17  ;;  %1862 = vmatprep.subr.bf16.mxu0 %v4854_v19  ;;  %v4939_v17 = vld [vmem:[%s7036_s1 + $0x2a8] ss:$16 sps:$4 sm:$0xff]   ;;  %v4950_v19 = vld [vmem:[%s7036_s1 + $0x2cc] ss:$16 sps:$4 sm:$0xff]  }
  0x49   :  { %2217 = vmatprep.subr.bf16.mxu1 %v4858_v20  ;;  %v5872_v20 = vld [vmem:[%s7037_s0 + $0x188] ss:$28 sps:$4 sm:$0xff]  }
  0x4a   :  { %1788 = vmatmul.mubr.bf16.gmra.mrb[4].mxu0 %v5630_v18 }
  0x4b   :  { %2167 = vmatmul.mubr.bf16.gmra.mrb[20].mxu1 %v4855_v22  ;;  %1863 = vmatpush1.bf16.msra.mxu0 %v4852_v21  ;;  %v4945_v21 = vld [vmem:[%s7036_s1 + $0x3c0] ss:$16 sps:$4 sm:$0xff]   ;;  %v4948_v22 = vld [vmem:[%s7036_s1 + $0x2c8] ss:$16 sps:$4 sm:$0xff]  }
  0x4c   :  { %2218 = vmatpush1.bf16.msra.mxu1 %v4856_v23  ;;  %1864 = vmatprep.subr.bf16.mxu0 %v4861_v24  ;;  %v4953_v23 = vld [vmem:[%s7036_s1 + $0x3e4] ss:$16 sps:$4 sm:$0xff]   ;;  %v4956_v24 = vld [vmem:[%s7036_s1 + $0x2ec] ss:$16 sps:$4 sm:$0xff]  }
  0x4d   :  { %2219 = vmatprep.subr.bf16.mxu1 %v4864_v25  ;;  %1797 = vmatprep.mubr.bf16.mxu0 %v5658_v26  ;;  %v5889_v25 = vld [vmem:[%s7037_s0 + $0xc] ss:$28 sps:$4 sm:$0xff]  }
  0x4e   :  { %2176 = vmatprep.mubr.bf16.mxu1 %v5333_v1 }
  0x4f   :  { %1865 = vmatpush1.bf16.msra.mxu0 %v4859_v27  ;;  %v4954_v27 = vld [vmem:[%s7036_s1 + $0x2e8] ss:$16 sps:$4 sm:$0xff]  }
  0x50   :  { %2220 = vmatpush1.bf16.msra.mxu1 %v4862_v28  ;;  %1866 = vmatprep.subr.bf16.mxu0 %v4870_v29  ;;  %v4962_v28 = vld [vmem:[%s7036_s1 + $0x404] ss:$16 sps:$4 sm:$0xff]   ;;  %v4965_v29 = vld [vmem:[%s7036_s1 + $0x30c] ss:$16 sps:$4 sm:$0xff]  }
  0x51   :  { %2221 = vmatprep.subr.bf16.mxu1 %v4874_v30  ;;  %v5908_v30 = vld [vmem:[%s7037_s0 + $0x8] ss:$28 sps:$4 sm:$0xff]  }
  0x52   :  { %1798 = vmatmul.mubr.bf16.gmra.mrb[8].mxu0 %v5678_v31 }
  0x53   :  { %2177 = vmatmul.mubr.bf16.gmra.mrb[24].mxu1 %v4871_v33  ;;  %1867 = vmatpush1.bf16.msra.mxu0 %v4868_v32  ;;  %v4963_v32 = vld [vmem:[%s7036_s1 + $0x308] ss:$16 sps:$4 sm:$0xff]   ;;  %v4968_v33 = vld [vmem:[%s7036_s1 + $0x424] ss:$16 sps:$4 sm:$0xff]  }
  0x54   :  { %2222 = vmatpush1.bf16.msra.mxu1 %v4872_v34  ;;  %1868 = vmatprep.subr.bf16.mxu0 %v4877_v35  ;;  %v4971_v34 = vld [vmem:[%s7036_s1 + $0x32c] ss:$16 sps:$4 sm:$0xff]   ;;  %v5927_v35 = vld [vmem:[%s7037_s0 + $0x44] ss:$28 sps:$4 sm:$0xff]  }
  0x55   :  { %2223 = vmatprep.subr.bf16.mxu1 %v4880_v36  ;;  %1807 = vmatprep.mubr.bf16.mxu0 %v5698_v37  ;;  %v4966_v36 = vld [vmem:[%s7036_s1 + $0x420] ss:$16 sps:$4 sm:$0xff]  }
  0x56   :  { %2186 = vmatprep.mubr.bf16.mxu1 %v5333_v1 }
  0x57   :  { %1869 = vmatpush1.bf16.msra.mxu0 %v4875_v38  ;;  %v4977_v38 = vld [vmem:[%s7036_s1 + $0x444] ss:$16 sps:$4 sm:$0xff]  }
  0x58   :  { %2224 = vmatpush1.bf16.msra.mxu1 %v4878_v39  ;;  %1870 = vmatprep.subr.bf16.mxu0 %v4886_v40  ;;  %v4980_v39 = vld [vmem:[%s7036_s1 + $0x34c] ss:$16 sps:$4 sm:$0xff]  }
  0x59   :  { %2225 = vmatprep.subr.bf16.mxu1 %v4890_v41  ;;  %v5948_v40 = vld [vmem:[%s7037_s0 + $0x40] ss:$28 sps:$4 sm:$0xff]  }
  0x5a   :  { %1808 = vmatmul.mubr.bf16.gmra.mrb[12].mxu0 %v5718_v42  ;;  %v4975_v41 = vld [vmem:[%s7036_s1 + $0x440] ss:$16 sps:$4 sm:$0xff]  }
  0x5b   :  { %2187 = vmatmul.mubr.bf16.gmra.mrb[28].mxu1 %v4887_v44  ;;  %1871 = vmatpush1.bf16.msra.mxu0 %v4884_v43  ;;  %v4983_v43 = vld [vmem:[%s7036_s1 + $0x464] ss:$16 sps:$4 sm:$0xff]   ;;  %v4986_v44 = vld [vmem:[%s7036_s1 + $0x36c] ss:$16 sps:$4 sm:$0xff]  }
  0x5c   :  { %2226 = vmatpush1.bf16.msra.mxu1 %v4888_v45  ;;  %1872 = vmatprep.subr.bf16.mxu0 %v4893_v46  ;;  %v5965_v45 = vld [vmem:[%s7037_s0 + $0x7c] ss:$28 sps:$4 sm:$0xff]   ;;  %v4981_v46 = vld [vmem:[%s7036_s1 + $0x460] ss:$16 sps:$4 sm:$0xff]  }
  0x5d   :  { %2227 = vmatprep.subr.bf16.mxu1 %v4896_v47  ;;  %1817 = vmatprep.mubr.bf16.mxu0 %v5738_v48  ;;  %v4984_v47 = vld [vmem:[%s7036_s1 + $0x368] ss:$16 sps:$4 sm:$0xff]  }
  0x5e   :  { %2229 = vmatprep.mubr.bf16.mxu1 %v5545_v56  ;;  %v4911_v56 = vld [vmem:[%s7036_s1 + $0x22c] ss:$16 sps:$4 sm:$0xff]  }
  0x5f   :  { %1873 = vmatpush1.bf16.msra.mxu0 %v4891_v49  ;;  %v4995_v49 = vld [vmem:[%s7036_s1 + $0x38c] ss:$16 sps:$4 sm:$0xff]  }
  0x60   :  { %2228 = vmatpush1.bf16.msra.mxu1 %v4894_v50  ;;  %1874 = vmatprep.subr.bf16.mxu0 %v4902_v51  ;;  %v5986_v50 = vld [vmem:[%s7037_s0 + $0x78] ss:$28 sps:$4 sm:$0xff]   ;;  %v4990_v51 = vld [vmem:[%s7036_s1 + $0x480] ss:$16 sps:$4 sm:$0xff]  }
  0x61   :  { %2310 = vmatprep.subr.bf16.mxu1 %v4905_v52  ;;  %v4993_v52 = vld [vmem:[%s7036_s1 + $0x388] ss:$16 sps:$4 sm:$0xff]  }
  0x62   :  { %1818 = vmatmul.mubr.bf16.gmra.mrb[16].mxu0 %v5758_v53 }
  0x63   :  { %2230 = vmatmul.mubr.bf16.vlgmr.msra.gmra.mrb[32].mxu1 %v5591_v7  ;;  %1875 = vmatpush1.bf16.msra.mxu0 %v4900_v54  ;;  %v4924_v7 = vld [vmem:[%s7036_s1 + $0x268] ss:$16 sps:$4 sm:$0xff]   ;;  %v5001_v54 = vld [vmem:[%s7036_s1 + $0x3ac] ss:$16 sps:$4 sm:$0xff]  }
  0x64   :  { %2311 = vmatpush1.bf16.msra.mxu1 %v4903_v55  ;;  %1876 = vmatprep.subr.bf16.mxu0 %v4908_v57  ;;  %v6003_v55 = vld [vmem:[%s7037_s0 + $0xb4] ss:$28 sps:$4 sm:$0xff]  }
  0x65   :  { %2312 = vmatprep.subr.bf16.mxu1 %v4911_v56  ;;  %1827 = vmatprep.mubr.bf16.mxu0 %v5775_v58  ;;  %v4996_v57 = vld [vmem:[%s7036_s1 + $0x4a0] ss:$16 sps:$4 sm:$0xff]   ;;  %v4999_v56 = vld [vmem:[%s7036_s1 + $0x3a8] ss:$16 sps:$4 sm:$0xff]  }
  0x66   :  { %2239 = vmatprep.mubr.bf16.mxu1 %v5618_v15  ;;  %v5851_v15 = vld [vmem:[%s7037_s0 + $0x18c] ss:$28 sps:$4 sm:$0xff]  }
  0x67   :  { %1877 = vmatpush1.bf16.msra.mxu0 %v4906_v59  ;;  %v5010_v59 = vld [vmem:[%s7036_s1 + $0x3cc] ss:$16 sps:$4 sm:$0xff]  }
  0x68   :  { %2313 = vmatpush1.bf16.msra.mxu1 %v4909_v60  ;;  %1878 = vmatprep.subr.bf16.mxu0 %v4917_v61  ;;  %v6024_v60 = vld [vmem:[%s7037_s0 + $0xb0] ss:$28 sps:$4 sm:$0xff]  }
  0x69   :  { %2314 = vmatprep.subr.bf16.mxu1 %v4920_v62  ;;  %v5005_v61 = vld [vmem:[%s7036_s1 + $0x4c0] ss:$16 sps:$4 sm:$0xff]   ;;  %v5008_v62 = vld [vmem:[%s7036_s1 + $0x3c8] ss:$16 sps:$4 sm:$0xff]  }
  0x6a   :  { %1828 = vmatmul.mubr.bf16.gmra.mrb[20].mxu0 %v5796_v63 }
  0x6b   :  { %2240 = vmatmul.mubr.bf16.gmra.mrb[36].mxu1 %v5630_v18  ;;  %1879 = vmatpush1.bf16.msra.mxu0 %v4915_v0  ;;  %v4947_v18 = vld [vmem:[%s7036_s1 + $0x3c4] ss:$16 sps:$4 sm:$0xff]   ;;  %v5016_v0 = vld [vmem:[%s7036_s1 + $0x3ec] ss:$16 sps:$4 sm:$0xff]  }
  0x6c   :  { %2315 = vmatpush1.bf16.msra.mxu1 %v4918_v2  ;;  %1880 = vmatprep.subr.bf16.mxu0 %v4923_v3  ;;  %v6041_v2 = vld [vmem:[%s7037_s0 + $0xec] ss:$28 sps:$4 sm:$0xff]   ;;  %v5011_v3 = vld [vmem:[%s7036_s1 + $0x4e0] ss:$16 sps:$4 sm:$0xff]  }
  0x6d   :  { %2316 = vmatprep.subr.bf16.mxu1 %v4926_v4  ;;  %1837 = vmatprep.mubr.bf16.mxu0 %v5813_v5  ;;  %v5014_v4 = vld [vmem:[%s7036_s1 + $0x3e8] ss:$16 sps:$4 sm:$0xff]  }
  0x6e   :  { %2249 = vmatprep.mubr.bf16.mxu1 %v5658_v26  ;;  %v4951_v26 = vld [vmem:[%s7036_s1 + $0x3e0] ss:$16 sps:$4 sm:$0xff]  }
  0x6f   :  { %1881 = vmatpush1.bf16.msra.mxu0 %v4921_v6  ;;  %v5025_v6 = vld [vmem:[%s7036_s1 + $0x40c] ss:$16 sps:$4 sm:$0xff]  }
  0x70   :  { %2317 = vmatpush1.bf16.msra.mxu1 %v4924_v7  ;;  %1882 = vmatprep.subr.bf16.mxu0 %v4932_v8  ;;  %v6062_v7 = vld [vmem:[%s7037_s0 + $0xe8] ss:$28 sps:$4 sm:$0xff]   ;;  %v5020_v8 = vld [vmem:[%s7036_s1 + $0x500] ss:$16 sps:$4 sm:$0xff]  }
  0x71   :  { %2318 = vmatprep.subr.bf16.mxu1 %v4935_v9  ;;  %v5023_v9 = vld [vmem:[%s7036_s1 + $0x408] ss:$16 sps:$4 sm:$0xff]  }
  0x72   :  { %1838 = vmatmul.mubr.bf16.gmra.mrb[24].mxu0 %v5834_v10 }
  0x73   :  { %2250 = vmatmul.mubr.bf16.gmra.mrb[40].mxu1 %v5678_v31  ;;  %1883 = vmatpush1.bf16.msra.mxu0 %v4930_v11  ;;  %v4960_v31 = vld [vmem:[%s7036_s1 + $0x400] ss:$16 sps:$4 sm:$0xff]   ;;  %v5031_v11 = vld [vmem:[%s7036_s1 + $0x42c] ss:$16 sps:$4 sm:$0xff]  }
  0x74   :  { %2319 = vmatpush1.bf16.msra.mxu1 %v4933_v12  ;;  %1884 = vmatprep.subr.bf16.mxu0 %v4938_v13  ;;  %v6079_v12 = vld [vmem:[%s7037_s0 + $0x124] ss:$28 sps:$4 sm:$0xff]  }
  0x75   :  { %2320 = vmatprep.subr.bf16.mxu1 %v4941_v14  ;;  %1847 = vmatprep.mubr.bf16.mxu0 %v5851_v15  ;;  %v5026_v13 = vld [vmem:[%s7036_s1 + $0x520] ss:$16 sps:$4 sm:$0xff]   ;;  %v5029_v14 = vld [vmem:[%s7036_s1 + $0x428] ss:$16 sps:$4 sm:$0xff]  }
  0x76   :  { %2259 = vmatprep.mubr.bf16.mxu1 %v5698_v37  ;;  %v4969_v37 = vld [vmem:[%s7036_s1 + $0x328] ss:$16 sps:$4 sm:$0xff]  }
  0x77   :  { %1885 = vmatpush1.bf16.msra.mxu0 %v4936_v16  ;;  %v5040_v16 = vld [vmem:[%s7036_s1 + $0x44c] ss:$16 sps:$4 sm:$0xff]  }
  0x78   :  { %2321 = vmatpush1.bf16.msra.mxu1 %v4939_v17  ;;  %1886 = vmatprep.subr.bf16.mxu0 %v4947_v18  ;;  %v6100_v17 = vld [vmem:[%s7037_s0 + $0x120] ss:$28 sps:$4 sm:$0xff]  }
  0x79   :  { %2322 = vmatprep.subr.bf16.mxu1 %v4950_v19  ;;  %v5035_v18 = vld [vmem:[%s7036_s1 + $0x540] ss:$16 sps:$4 sm:$0xff]   ;;  %v5038_v19 = vld [vmem:[%s7036_s1 + $0x448] ss:$16 sps:$4 sm:$0xff]  }
  0x7a   :  { %1848 = vmatmul.mubr.bf16.gmra.mrb[28].mxu0 %v5872_v20 }
  0x7b   :  { %2260 = vmatmul.mubr.bf16.gmra.mrb[44].mxu1 %v5718_v42  ;;  %1887 = vmatpush1.bf16.msra.mxu0 %v4945_v21  ;;  %v4978_v42 = vld [vmem:[%s7036_s1 + $0x348] ss:$16 sps:$4 sm:$0xff]   ;;  %v5046_v21 = vld [vmem:[%s7036_s1 + $0x46c] ss:$16 sps:$4 sm:$0xff]  }
  0x7c   :  { %2323 = vmatpush1.bf16.msra.mxu1 %v4948_v22  ;;  %1888 = vmatprep.subr.bf16.mxu0 %v4953_v23  ;;  %v6117_v22 = vld [vmem:[%s7037_s0 + $0x15c] ss:$28 sps:$4 sm:$0xff]   ;;  %v5041_v23 = vld [vmem:[%s7036_s1 + $0x560] ss:$16 sps:$4 sm:$0xff]  }
  0x7d   :  { %2324 = vmatprep.subr.bf16.mxu1 %v4956_v24  ;;  %1890 = vmatprep.mubr.bf16.mxu0 %v5889_v25  ;;  %v5044_v24 = vld [vmem:[%s7036_s1 + $0x468] ss:$16 sps:$4 sm:$0xff]  }
  0x7e   :  { %2269 = vmatprep.mubr.bf16.mxu1 %v5738_v48  ;;  %v4992_v48 = vld [vmem:[%s7036_s1 + $0x484] ss:$16 sps:$4 sm:$0xff]  }
  0x7f   :  { %1889 = vmatpush1.bf16.msra.mxu0 %v4951_v26  ;;  %v5055_v26 = vld [vmem:[%s7036_s1 + $0x48c] ss:$16 sps:$4 sm:$0xff]  }
  0x80   :  { %2325 = vmatpush1.bf16.msra.mxu1 %v4954_v27  ;;  %1971 = vmatprep.subr.bf16.mxu0 %v4962_v28  ;;  %v6138_v27 = vld [vmem:[%s7037_s0 + $0x158] ss:$28 sps:$4 sm:$0xff]   ;;  %v5050_v28 = vld [vmem:[%s7036_s1 + $0x580] ss:$16 sps:$4 sm:$0xff]  }
  0x81   :  { %2326 = vmatprep.subr.bf16.mxu1 %v4965_v29  ;;  %v5053_v29 = vld [vmem:[%s7036_s1 + $0x488] ss:$16 sps:$4 sm:$0xff]  }
  0x82   :  { %1891 = vmatmul.mubr.bf16.vlgmr.msra.gmra.mrb[0].mxu0 %v5908_v30 }
  0x83   :  { %2270 = vmatmul.mubr.bf16.gmra.mrb[48].mxu1 %v5758_v53  ;;  %1972 = vmatpush1.bf16.msra.mxu0 %v4960_v31  ;;  %v4998_v53 = vld [vmem:[%s7036_s1 + $0x4a4] ss:$16 sps:$4 sm:$0xff]   ;;  %v5061_v31 = vld [vmem:[%s7036_s1 + $0x4ac] ss:$16 sps:$4 sm:$0xff]  }
  0x84   :  { %2327 = vmatpush1.bf16.msra.mxu1 %v4963_v32  ;;  %1973 = vmatprep.subr.bf16.mxu0 %v4968_v33  ;;  %v6155_v32 = vld [vmem:[%s7037_s0 + $0x194] ss:$28 sps:$4 sm:$0xff]  }
  0x85   :  { %2328 = vmatprep.subr.bf16.mxu1 %v4971_v34  ;;  %1900 = vmatprep.mubr.bf16.mxu0 %v5927_v35  ;;  %v5056_v33 = vld [vmem:[%s7036_s1 + $0x5a0] ss:$16 sps:$4 sm:$0xff]   ;;  %v5059_v34 = vld [vmem:[%s7036_s1 + $0x4a8] ss:$16 sps:$4 sm:$0xff]  }
  0x86   :  { %2279 = vmatprep.mubr.bf16.mxu1 %v5775_v58  ;;  %v5007_v58 = vld [vmem:[%s7036_s1 + $0x4c4] ss:$16 sps:$4 sm:$0xff]  }
  0x87   :  { %1974 = vmatpush1.bf16.msra.mxu0 %v4966_v36  ;;  %v5070_v36 = vld [vmem:[%s7036_s1 + $0x4cc] ss:$16 sps:$4 sm:$0xff]  }
  0x88   :  { %2329 = vmatpush1.bf16.msra.mxu1 %v4969_v37  ;;  %1975 = vmatprep.subr.bf16.mxu0 %v4977_v38  ;;  %v6176_v37 = vld [vmem:[%s7037_s0 + $0x190] ss:$28 sps:$4 sm:$0xff]  }
  0x89   :  { %2330 = vmatprep.subr.bf16.mxu1 %v4980_v39  ;;  %v5065_v38 = vld [vmem:[%s7036_s1 + $0x5c0] ss:$16 sps:$4 sm:$0xff]   ;;  %v5068_v39 = vld [vmem:[%s7036_s1 + $0x4c8] ss:$16 sps:$4 sm:$0xff]  }
  0x8a   :  { %1901 = vmatmul.mubr.bf16.gmra.mrb[4].mxu0 %v5948_v40 }
  0x8b   :  { %2280 = vmatmul.mubr.bf16.gmra.mrb[52].mxu1 %v5796_v63  ;;  %1976 = vmatpush1.bf16.msra.mxu0 %v4975_v41  ;;  %v5013_v63 = vld [vmem:[%s7036_s1 + $0x4e4] ss:$16 sps:$4 sm:$0xff]   ;;  %v5076_v41 = vld [vmem:[%s7036_s1 + $0x4ec] ss:$16 sps:$4 sm:$0xff]  }
  0x8c   :  { %2331 = vmatpush1.bf16.msra.mxu1 %v4978_v42  ;;  %1977 = vmatprep.subr.bf16.mxu0 %v4983_v43  ;;  %v6193_v42 = vld [vmem:[%s7037_s0 + $0x14] ss:$28 sps:$4 sm:$0xff]  }
  0x8d   :  { %2332 = vmatprep.subr.bf16.mxu1 %v4986_v44  ;;  %1910 = vmatprep.mubr.bf16.mxu0 %v5965_v45  ;;  %v5071_v43 = vld [vmem:[%s7036_s1 + $0x5e0] ss:$16 sps:$4 sm:$0xff]   ;;  %v5074_v44 = vld [vmem:[%s7036_s1 + $0x4e8] ss:$16 sps:$4 sm:$0xff]  }
  0x8e   :  { %2289 = vmatprep.mubr.bf16.mxu1 %v5813_v5  ;;  %v5022_v5 = vld [vmem:[%s7036_s1 + $0x504] ss:$16 sps:$4 sm:$0xff]  }
  0x8f   :  { %1978 = vmatpush1.bf16.msra.mxu0 %v4981_v46  ;;  %v6211_v46 = vld [vmem:[%s7037_s0 + $0x10] ss:$28 sps:$4 sm:$0xff]  }
  0x90   :  { %2333 = vmatpush1.bf16.msra.mxu1 %v4984_v47  ;;  %1979 = vmatprep.subr.bf16.mxu0 %v4992_v48  ;;  %v5080_v47 = vld [vmem:[%s7036_s1 + $0x508] ss:$16 sps:$4 sm:$0xff]  }
  0x91   :  { %2334 = vmatprep.subr.bf16.mxu1 %v4995_v49  ;;  %v6219_v48 = vld [vmem:[%s7037_s0 + $0x4c] ss:$28 sps:$4 sm:$0xff]  }
  0x92   :  { %1911 = vmatmul.mubr.bf16.gmra.mrb[8].mxu0 %v5986_v50  ;;  %v5085_v49 = vld [vmem:[%s7036_s1 + $0x52c] ss:$16 sps:$4 sm:$0xff]  }
  0x93   :  { %2290 = vmatmul.mubr.bf16.gmra.mrb[56].mxu1 %v5834_v10  ;;  %1980 = vmatpush1.bf16.msra.mxu0 %v4990_v51  ;;  %v5028_v10 = vld [vmem:[%s7036_s1 + $0x524] ss:$16 sps:$4 sm:$0xff]   ;;  %v5091_v51 = vld [vmem:[%s7036_s1 + $0x54c] ss:$16 sps:$4 sm:$0xff]  }
  0x94   :  { %2335 = vmatpush1.bf16.msra.mxu1 %v4993_v52  ;;  %1981 = vmatprep.subr.bf16.mxu0 %v4998_v53  ;;  %v6237_v52 = vld [vmem:[%s7037_s0 + $0x48] ss:$28 sps:$4 sm:$0xff]  }
  0x95   :  { %2336 = vmatprep.subr.bf16.mxu1 %v5001_v54  ;;  %1920 = vmatprep.mubr.bf16.mxu0 %v6003_v55  ;;  %v5089_v53 = vld [vmem:[%s7036_s1 + $0x548] ss:$16 sps:$4 sm:$0xff]   ;;  %v6245_v54 = vld [vmem:[%s7037_s0 + $0x84] ss:$28 sps:$4 sm:$0xff]  }
  0x96   :  { %2299 = vmatprep.mubr.bf16.mxu1 %v5851_v15  ;;  %v5037_v15 = vld [vmem:[%s7036_s1 + $0x544] ss:$16 sps:$4 sm:$0xff]  }
  0x97   :  { %1982 = vmatpush1.bf16.msra.mxu0 %v4996_v57  ;;  %v5092_v57 = vld [vmem:[%s7036_s1 + $0x568] ss:$16 sps:$4 sm:$0xff]  }
  0x98   :  { %2337 = vmatpush1.bf16.msra.mxu1 %v4999_v56  ;;  %1983 = vmatprep.subr.bf16.mxu0 %v5007_v58  ;;  %v5100_v56 = vld [vmem:[%s7036_s1 + $0x58c] ss:$16 sps:$4 sm:$0xff]  }
  0x99   :  { %2338 = vmatprep.subr.bf16.mxu1 %v5010_v59  ;;  %v6263_v58 = vld [vmem:[%s7037_s0 + $0x80] ss:$28 sps:$4 sm:$0xff]   ;;  %v5098_v59 = vld [vmem:[%s7036_s1 + $0x588] ss:$16 sps:$4 sm:$0xff]  }
  0x9a   :  { %1921 = vmatmul.mubr.bf16.gmra.mrb[12].mxu0 %v6024_v60 }
  0x9b   :  { %2300 = vmatmul.mubr.bf16.gmra.mrb[60].mxu1 %v5872_v20  ;;  %1984 = vmatpush1.bf16.msra.mxu0 %v5005_v61  ;;  %v5043_v20 = vld [vmem:[%s7036_s1 + $0x564] ss:$16 sps:$4 sm:$0xff]   ;;  %v5103_v61 = vld [vmem:[%s7036_s1 + $0x5ac] ss:$16 sps:$4 sm:$0xff]  }
  0x9c   :  { %2339 = vmatpush1.bf16.msra.mxu1 %v5008_v62  ;;  %1985 = vmatprep.subr.bf16.mxu0 %v5013_v63  ;;  %v5101_v62 = vld [vmem:[%s7036_s1 + $0x5a8] ss:$16 sps:$4 sm:$0xff]   ;;  %v5109_v63 = vld [vmem:[%s7036_s1 + $0x5cc] ss:$16 sps:$4 sm:$0xff]  }
  0x9d   :  { %2340 = vmatprep.subr.bf16.mxu1 %v5016_v0  ;;  %1930 = vmatprep.mubr.bf16.mxu0 %v6041_v2  ;;  %v6289_v0 = vld [vmem:[%s7037_s0 + $0xb8] ss:$28 sps:$4 sm:$0xff]  }
  0x9e   :  { %2342 = vmatprep.mubr.bf16.mxu1 %v5889_v25  ;;  %v5052_v25 = vld [vmem:[%s7036_s1 + $0x584] ss:$16 sps:$4 sm:$0xff]  }
  0x9f   :  { %1986 = vmatpush1.bf16.msra.mxu0 %v5011_v3  ;;  %v6297_v3 = vld [vmem:[%s7037_s0 + $0xf4] ss:$28 sps:$4 sm:$0xff]  }
  0xa0   :  { %2341 = vmatpush1.bf16.msra.mxu1 %v5014_v4  ;;  %1987 = vmatprep.subr.bf16.mxu0 %v5022_v5  ;;  %v5112_v4 = vld [vmem:[%s7036_s1 + $0x5ec] ss:$16 sps:$4 sm:$0xff]   ;;  %v5110_v5 = vld [vmem:[%s7036_s1 + $0x5e8] ss:$16 sps:$4 sm:$0xff]  }
  0xa1   :  { %2423 = vmatprep.subr.bf16.mxu1 %v5025_v6  ;;  %v5118_v6 = vld [vmem:[%s7036_s1 + $0x60c] ss:$16 sps:$4 sm:$0xff]  }
  0xa2   :  { %1931 = vmatmul.mubr.bf16.gmra.mrb[16].mxu0 %v6062_v7 }
  0xa3   :  { %2343 = vmatmul.mubr.bf16.vlgmr.msra.gmra.mrb[32].mxu1 %v5908_v30  ;;  %1988 = vmatpush1.bf16.msra.mxu0 %v5020_v8  ;;  %v5058_v30 = vld [vmem:[%s7036_s1 + $0x5a4] ss:$16 sps:$4 sm:$0xff]  }
  0xa4   :  { %2424 = vmatpush1.bf16.msra.mxu1 %v5023_v9  ;;  %1989 = vmatprep.subr.bf16.mxu0 %v5028_v10  ;;  %v5151_v8 = vld [vmem:[%s7038_s3 + $0x4] ss:$8 sps:$4 sm:$0xff]   ;;  %v5154_v9 = vld [vmem:[%s7038_s3 + $0x14] ss:$8 sps:$4 sm:$0xff]  }
  0xa5   :  { %2425 = vmatprep.subr.bf16.mxu1 %v5031_v11  ;;  %1940 = vmatprep.mubr.bf16.mxu0 %v6079_v12  ;;  %v6324_v10 = vld [vmem:[%s7037_s0 + $0xf0] ss:$28 sps:$4 sm:$0xff]   ;;  %v5116_v11 = vld [vmem:[%s7036_s1 + $0x608] ss:$16 sps:$4 sm:$0xff]  }
  0xa6   :  { %2352 = vmatprep.mubr.bf16.mxu1 %v5927_v35  ;;  %v5067_v35 = vld [vmem:[%s7036_s1 + $0x5c4] ss:$16 sps:$4 sm:$0xff]  }
  0xa7   :  { %1990 = vmatpush1.bf16.msra.mxu0 %v5026_v13  ;;  %v5124_v13 = vld [vmem:[%s7036_s1 + $0x62c] ss:$16 sps:$4 sm:$0xff]  }
  0xa8   :  { %2426 = vmatpush1.bf16.msra.mxu1 %v5029_v14  ;;  %1991 = vmatprep.subr.bf16.mxu0 %v5037_v15  ;;  %v5152_v14 = vld [vmem:[%s7038_s3 + $0x10] ss:$8 sps:$4 sm:$0xff]   ;;  %v5157_v15 = vld [vmem:[%s7038_s3 + $0x24] ss:$8 sps:$4 sm:$0xff]  }
  0xa9   :  { %2427 = vmatprep.subr.bf16.mxu1 %v5040_v16  ;;  %v5122_v16 = vld [vmem:[%s7036_s1 + $0x628] ss:$16 sps:$4 sm:$0xff]  }
  0xaa   :  { %1941 = vmatmul.mubr.bf16.gmra.mrb[20].mxu0 %v6100_v17 }
  0xab   :  { %2353 = vmatmul.mubr.bf16.gmra.mrb[36].mxu1 %v5948_v40  ;;  %1992 = vmatpush1.bf16.msra.mxu0 %v5035_v18  ;;  %v5073_v40 = vld [vmem:[%s7036_s1 + $0x5e4] ss:$16 sps:$4 sm:$0xff]   ;;  %v5155_v18 = vld [vmem:[%s7038_s3 + $0x20] ss:$8 sps:$4 sm:$0xff]  }
  0xac   :  { %2428 = vmatpush1.bf16.msra.mxu1 %v5038_v19  ;;  %1993 = vmatprep.subr.bf16.mxu0 %v5043_v20  ;;  %v6359_v19 = vld [vmem:[%s7037_s0 + $0x128] ss:$28 sps:$4 sm:$0xff]  }
  0xad   :  { %2429 = vmatprep.subr.bf16.mxu1 %v5046_v21  ;;  %1950 = vmatprep.mubr.bf16.mxu0 %v6117_v22  ;;  %v6364_v20 = vld [vmem:[%s7037_s0 + $0x164] ss:$28 sps:$4 sm:$0xff]   ;;  %v5128_v21 = vld [vmem:[%s7036_s1 + $0x648] ss:$16 sps:$4 sm:$0xff]  }
  0xae   :  { %2362 = vmatprep.mubr.bf16.mxu1 %v5965_v45  ;;  %v5082_v45 = vld [vmem:[%s7036_s1 + $0x50c] ss:$16 sps:$4 sm:$0xff]  }
  0xaf   :  { %1994 = vmatpush1.bf16.msra.mxu0 %v5041_v23  ;;  %v5136_v23 = vld [vmem:[%s7036_s1 + $0x66c] ss:$16 sps:$4 sm:$0xff]  }
  0xb0   :  { %2430 = vmatpush1.bf16.msra.mxu1 %v5044_v24  ;;  %1995 = vmatprep.subr.bf16.mxu0 %v5052_v25  ;;  %v5158_v24 = vld [vmem:[%s7038_s3 + $0x30] ss:$8 sps:$4 sm:$0xff]   ;;  %v5163_v25 = vld [vmem:[%s7038_s3 + $0x44] ss:$8 sps:$4 sm:$0xff]  }
  0xb1   :  { %2431 = vmatprep.subr.bf16.mxu1 %v5055_v26  ;;  %v5134_v26 = vld [vmem:[%s7036_s1 + $0x668] ss:$16 sps:$4 sm:$0xff]  }
  0xb2   :  { %1951 = vmatmul.mubr.bf16.gmra.mrb[24].mxu0 %v6138_v27 }
  0xb3   :  { %2363 = vmatmul.mubr.bf16.gmra.mrb[40].mxu1 %v5986_v50  ;;  %1996 = vmatpush1.bf16.msra.mxu0 %v5050_v28  ;;  %v5083_v50 = vld [vmem:[%s7036_s1 + $0x528] ss:$16 sps:$4 sm:$0xff]   ;;  %v5139_v28 = vld [vmem:[%s7036_s1 + $0x68c] ss:$16 sps:$4 sm:$0xff]  }
  0xb4   :  { %2432 = vmatpush1.bf16.msra.mxu1 %v5053_v29  ;;  %1997 = vmatprep.subr.bf16.mxu0 %v5058_v30  ;;  %v5161_v29 = vld [vmem:[%s7038_s3 + $0x40] ss:$8 sps:$4 sm:$0xff]   ;;  %v6402_v30 = vld [vmem:[%s7037_s0 + $0x19c] ss:$28 sps:$4 sm:$0xff]  }
  0xb5   :  { %2433 = vmatprep.subr.bf16.mxu1 %v5061_v31  ;;  %1960 = vmatprep.mubr.bf16.mxu0 %v6155_v32  ;;  %v5137_v31 = vld [vmem:[%s7036_s1 + $0x688] ss:$16 sps:$4 sm:$0xff]  }
  0xb6   :  { %2372 = vmatprep.mubr.bf16.mxu1 %v6003_v55  ;;  %v5094_v55 = vld [vmem:[%s7036_s1 + $0x56c] ss:$16 sps:$4 sm:$0xff]  }
  0xb7   :  { %1998 = vmatpush1.bf16.msra.mxu0 %v5056_v33  ;;  %v5142_v33 = vld [vmem:[%s7036_s1 + $0x6ac] ss:$16 sps:$4 sm:$0xff]  }
  0xb8   :  { %2434 = vmatpush1.bf16.msra.mxu1 %v5059_v34  ;;  %1999 = vmatprep.subr.bf16.mxu0 %v5067_v35  ;;  %v5164_v34 = vld [vmem:[%s7038_s3 + $0x50] ss:$8 sps:$4 sm:$0xff]   ;;  %v5169_v35 = vld [vmem:[%s7038_s3 + $0x64] ss:$8 sps:$4 sm:$0xff]  }
  0xb9   :  { %2435 = vmatprep.subr.bf16.mxu1 %v5070_v36  ;;  %v5140_v36 = vld [vmem:[%s7036_s1 + $0x6a8] ss:$16 sps:$4 sm:$0xff]  }
  0xba   :  { %1961 = vmatmul.mubr.bf16.gmra.mrb[28].mxu0 %v6176_v37 }
  0xbb   :  { %2373 = vmatmul.mubr.bf16.gmra.mrb[44].mxu1 %v6024_v60  ;;  %2000 = vmatpush1.bf16.msra.mxu0 %v5065_v38  ;;  %v6271_v60 = vld [vmem:[%s7037_s0 + $0xbc] ss:$28 sps:$4 sm:$0xff]   ;;  %v5167_v38 = vld [vmem:[%s7038_s3 + $0x60] ss:$8 sps:$4 sm:$0xff]  }
  0xbc   :  { %2436 = vmatpush1.bf16.msra.mxu1 %v5068_v39  ;;  %2001 = vmatprep.subr.bf16.mxu0 %v5073_v40  ;;  %v6435_v39 = vld [vmem:[%s7037_s0 + $0x198] ss:$28 sps:$4 sm:$0xff]  }
  0xbd   :  { %2437 = vmatprep.subr.bf16.mxu1 %v5076_v41  ;;  %2003 = vmatprep.mubr.bf16.mxu0 %v6193_v42  ;;  %v5172_v41 = vld [vmem:[%s7038_s3 + $0x74] ss:$8 sps:$4 sm:$0xff]  }
  0xbe   :  { %2382 = vmatprep.mubr.bf16.mxu1 %v6041_v2  ;;  %v5107_v2 = vld [vmem:[%s7036_s1 + $0x5c8] ss:$16 sps:$4 sm:$0xff]  }
  0xbf   :  { %2002 = vmatpush1.bf16.msra.mxu0 %v5071_v43  ;;  %v5143_v43 = vld [vmem:[%s7036_s1 + $0x6c8] ss:$16 sps:$4 sm:$0xff]  }
  0xc0   :  { %2438 = vmatpush1.bf16.msra.mxu1 %v5074_v44  ;;  %3269 = vmatprep.subr.bf16.mxu0 %v5151_v8 }
  0xc1   :  { %2439 = vmatprep.subr.bf16.mxu1 %v5082_v45 }
  0xc2   :  { %2004 = vmatmul.mubr.bf16.vlgmr.msra.gmra.mrb[0].mxu0 %v6211_v46 }
  0xc3   :  { %2383 = vmatmul.mubr.bf16.gmra.mrb[48].mxu1 %v6062_v7  ;;  %2013 = vmatprep.mubr.bf16.mxu0 %v6219_v48  ;;  %v5149_v7 = vld [vmem:[%s7038_s3] ss:$8 sps:$4 sm:$0xff]  }
  0xc4   :  { %2440 = vmatpush1.bf16.msra.mxu1 %v5080_v47  ;;  %2392 = vmatprep.mubr.bf16.mxu1 %v6079_v12  ;;  %v6332_v12 = vld [vmem:[%s7037_s0 + $0x12c] ss:$28 sps:$4 sm:$0xff]   ;;  %v5170_v47 = vld [vmem:[%s7038_s3 + $0x70] ss:$8 sps:$4 sm:$0xff]  }
  0xc5   :  { %2441 = vmatprep.subr.bf16.mxu1 %v5085_v49  ;;  %3270 = vmatpush1.bf16.msra.mxu0 %v5149_v7  ;;  %v5146_v49 = vld [vmem:[%s7036_s1 + $0x6e8] ss:$16 sps:$4 sm:$0xff]  }
  0xc6   :  { %3271 = vmatprep.subr.bf16.mxu0 %v5154_v9  ;;  %v5190_v9 = vld [vmem:[%s7038_s3 + $0xd4] ss:$8 sps:$4 sm:$0xff]  }
  0xc8   :  { %2442 = vmatpush1.bf16.msra.mxu1 %v5083_v50 }
  0xc9   :  { %2443 = vmatprep.subr.bf16.mxu1 %v5091_v51  ;;  %3272 = vmatpush1.bf16.msra.mxu0 %v5152_v14  ;;  %v5173_v51 = vld [vmem:[%s7038_s3 + $0x80] ss:$8 sps:$4 sm:$0xff]   ;;  %v5193_v14 = vld [vmem:[%s7038_s3 + $0xe4] ss:$8 sps:$4 sm:$0xff]  }
  0xca   :  { %2014 = vmatmul.mubr.bf16.gmra.mrb[4].mxu0 %v6237_v52  ;;  %3273 = vmatprep.subr.bf16.mxu0 %v5157_v15  ;;  %v5191_v15 = vld [vmem:[%s7038_s3 + $0xe0] ss:$8 sps:$4 sm:$0xff]  }
  0xcb   :  { %2393 = vmatmul.mubr.bf16.gmra.mrb[52].mxu1 %v6100_v17  ;;  %2023 = vmatprep.mubr.bf16.mxu0 %v6245_v54  ;;  %v5130_v17 = vld [vmem:[%s7036_s1 + $0x64c] ss:$16 sps:$4 sm:$0xff]  }
  0xcc   :  { %2444 = vmatpush1.bf16.msra.mxu1 %v5089_v53  ;;  %2402 = vmatprep.mubr.bf16.mxu1 %v6117_v22  ;;  %v5160_v22 = vld [vmem:[%s7038_s3 + $0x34] ss:$8 sps:$4 sm:$0xff]  }
  0xcd   :  { %2445 = vmatprep.subr.bf16.mxu1 %v5094_v55  ;;  %3274 = vmatpush1.bf16.msra.mxu0 %v5155_v18  ;;  %v5178_v53 = vld [vmem:[%s7038_s3 + $0x94] ss:$8 sps:$4 sm:$0xff]  }
  0xce   :  { %3275 = vmatprep.subr.bf16.mxu0 %v5160_v22  ;;  %v5325_v22 = vld [vmem:[%s7037_s0 + $0x18] ss:$28 sps:$4 sm:$0xff]  }
  0xd0   :  { %2446 = vmatpush1.bf16.msra.mxu1 %v5092_v57  ;;  %v5176_v57 = vld [vmem:[%s7038_s3 + $0x90] ss:$8 sps:$4 sm:$0xff]  }
  0xd1   :  { %2447 = vmatprep.subr.bf16.mxu1 %v5100_v56  ;;  %3276 = vmatpush1.bf16.msra.mxu0 %v5158_v24  ;;  %v5181_v56 = vld [vmem:[%s7038_s3 + $0xa4] ss:$8 sps:$4 sm:$0xff]  }
  0xd2   :  { %2024 = vmatmul.mubr.bf16.gmra.mrb[8].mxu0 %v6263_v58  ;;  %3277 = vmatprep.subr.bf16.mxu0 %v5163_v25 }
  0xd3   :  { %2403 = vmatmul.mubr.bf16.gmra.mrb[56].mxu1 %v6138_v27  ;;  %2033 = vmatprep.mubr.bf16.mxu0 %v6271_v60  ;;  %v6391_v27 = vld [vmem:[%s7037_s0 + $0x160] ss:$28 sps:$4 sm:$0xff]  }
  0xd4   :  { %2448 = vmatpush1.bf16.msra.mxu1 %v5098_v59  ;;  %2412 = vmatprep.mubr.bf16.mxu1 %v6155_v32  ;;  %v5166_v32 = vld [vmem:[%s7038_s3 + $0x54] ss:$8 sps:$4 sm:$0xff]   ;;  %v5179_v59 = vld [vmem:[%s7038_s3 + $0xa0] ss:$8 sps:$4 sm:$0xff]  }
  0xd5   :  { %2449 = vmatprep.subr.bf16.mxu1 %v5103_v61  ;;  %3278 = vmatpush1.bf16.msra.mxu0 %v5161_v29  ;;  %v5184_v61 = vld [vmem:[%s7038_s3 + $0xb4] ss:$8 sps:$4 sm:$0xff]  }
  0xd6   :  { %3279 = vmatprep.subr.bf16.mxu0 %v5166_v32  ;;  %v5327_v32 = vld [vmem:[%s7037_s0 + $0x88] ss:$28 sps:$4 sm:$0xff]  }
  0xd8   :  { %2450 = vmatpush1.bf16.msra.mxu1 %v5101_v62 }
  0xd9   :  { %2451 = vmatprep.subr.bf16.mxu1 %v5109_v63  ;;  %3280 = vmatpush1.bf16.msra.mxu0 %v5164_v34  ;;  %v5199_v34 = vld [vmem:[%s7038_s3 + $0x104] ss:$8 sps:$4 sm:$0xff]  }
  0xda   :  { %2034 = vmatmul.mubr.bf16.gmra.mrb[12].mxu0 %v6289_v0  ;;  %3281 = vmatprep.subr.bf16.mxu0 %v5169_v35  ;;  %v5329_v35 = vld [vmem:[%s7037_s0 + $0xf8] ss:$28 sps:$4 sm:$0xff]  }
  0xdb   :  { %2413 = vmatmul.mubr.bf16.gmra.mrb[60].mxu1 %v6176_v37  ;;  %2043 = vmatprep.mubr.bf16.mxu0 %v6297_v3  ;;  %v5145_v37 = vld [vmem:[%s7036_s1 + $0x6cc] ss:$16 sps:$4 sm:$0xff]  }
  0xdc   :  { %2452 = vmatpush1.bf16.msra.mxu1 %v5107_v2  ;;  %2455 = vmatprep.mubr.bf16.mxu1 %v6193_v42  ;;  %v5187_v2 = vld [vmem:[%s7038_s3 + $0xc4] ss:$8 sps:$4 sm:$0xff]  }
  0xdd   :  { %2453 = vmatprep.subr.bf16.mxu1 %v5112_v4  ;;  %3282 = vmatpush1.bf16.msra.mxu0 %v5167_v38  ;;  %v5185_v4 = vld [vmem:[%s7038_s3 + $0xc0] ss:$8 sps:$4 sm:$0xff]  }
  0xde   :  { %3283 = vmatprep.subr.bf16.mxu0 %v5172_v41  ;;  %v5332_v38 = vld [vmem:[%s7037_s0 + $0x1a0] ss:$28 sps:$4 sm:$0xff]  }
  0xe0   :  { %2454 = vmatpush1.bf16.msra.mxu1 %v5110_v5 }
  0xe1   :  { %2536 = vmatprep.subr.bf16.mxu1 %v5118_v6  ;;  %3284 = vmatpush1.bf16.msra.mxu0 %v5170_v47 }
  0xe2   :  { %2044 = vmatmul.mubr.bf16.gmra.mrb[16].mxu0 %v6324_v10 }
  0xe3   :  { %2456 = vmatmul.mubr.bf16.vlgmr.msra.gmra.mrb[32].mxu1 %v6211_v46  ;;  %2053 = vmatprep.mubr.bf16.mxu0 %v6332_v12  ;;  %v5148_v46 = vld [vmem:[%s7036_s1 + $0x6ec] ss:$16 sps:$4 sm:$0xff]  }
  0xe4   :  { %2537 = vmatpush1.bf16.msra.mxu1 %v5116_v11  ;;  %2465 = vmatprep.mubr.bf16.mxu1 %v6219_v48  ;;  %v5175_v48 = vld [vmem:[%s7038_s3 + $0x84] ss:$8 sps:$4 sm:$0xff]   ;;  %v5188_v11 = vld [vmem:[%s7038_s3 + $0xd0] ss:$8 sps:$4 sm:$0xff]  }
  0xe5   :  { %2538 = vmatprep.subr.bf16.mxu1 %v5124_v13  ;;  %3285 = vmatprep.subr.bf16.mxu0 %v5175_v48 }
  0xe6   :  { %3286 = vmatpush1.bf16.msra.mxu0 %v5173_v51 }
  0xe7   :  { %3287 = vmatprep.subr.bf16.mxu0 %v5178_v53 }
  0xe8   :  { %2539 = vmatpush1.bf16.msra.mxu1 %v5122_v16 }
  0xe9   :  { %2540 = vmatprep.subr.bf16.mxu1 %v5130_v17  ;;  %v5196_v17 = vld [vmem:[%s7038_s3 + $0xf4] ss:$8 sps:$4 sm:$0xff]  }
  0xea   :  { %2054 = vmatmul.mubr.bf16.gmra.mrb[20].mxu0 %v6359_v19 }
  0xeb   :  { %2466 = vmatmul.mubr.bf16.gmra.mrb[36].mxu1 %v6237_v52  ;;  %2063 = vmatprep.mubr.bf16.mxu0 %v6364_v20 }
  0xec   :  { %2475 = vmatprep.mubr.bf16.mxu1 %v6245_v54  ;;  %2541 = vmatpush1.bf16.msra.mxu1 %v5128_v21 }
  0xed   :  { %2542 = vmatprep.subr.bf16.mxu1 %v5136_v23  ;;  %3288 = vmatpush1.bf16.msra.mxu0 %v5176_v57 }
  0xee   :  { %3289 = vmatprep.subr.bf16.mxu0 %v5181_v56 }
  0xf0   :  { %2543 = vmatpush1.bf16.msra.mxu1 %v5134_v26 }
  0xf1   :  { %2544 = vmatprep.subr.bf16.mxu1 %v5139_v28  ;;  %3290 = vmatpush1.bf16.msra.mxu0 %v5179_v59 }
  0xf2   :  { %2064 = vmatmul.mubr.bf16.gmra.mrb[24].mxu0 %v6391_v27  ;;  %3291 = vmatprep.subr.bf16.mxu0 %v5184_v61 }
  0xf3   :  { %2476 = vmatmul.mubr.bf16.gmra.mrb[40].mxu1 %v6263_v58  ;;  %2073 = vmatprep.mubr.bf16.mxu0 %v6402_v30 }
  0xf4   :  { %2485 = vmatprep.mubr.bf16.mxu1 %v6271_v60  ;;  %2545 = vmatpush1.bf16.msra.mxu1 %v5137_v31 }
  0xf5   :  { %2546 = vmatprep.subr.bf16.mxu1 %v5142_v33  ;;  %v5328_v33 = vld [vmem:[%s7037_s0 + $0xc0] ss:$28 sps:$4 sm:$0xff]  }
  0xf6   :  { %v6437_v40 = vpop.f32.mrb[0].mxu1 }
  0xf7   :  { %v6442_v42 = vpop.f32.mrb[1].mxu1 }
  0xf8   :  { %v6447_v44 = vpop.f32.mrb[2].mxu1  ;;  %2547 = vmatpush1.bf16.msra.mxu1 %v5140_v36  ;;  %v5330_v36 = vld [vmem:[%s7037_s0 + $0x130] ss:$28 sps:$4 sm:$0xff]  }
  0xf9   :  { %v6449_v45 = vpop.f32.mrb[3].mxu1  ;;  %2548 = vmatprep.subr.bf16.mxu1 %v5145_v37  ;;  %v5331_v37 = vld [vmem:[%s7037_s0 + $0x168] ss:$28 sps:$4 sm:$0xff]  }
  0xfa   :  { %2074 = vmatmul.mubr.bf16.gmra.mrb[28].mxu0 %v6435_v39 }
  0xfb   :  { %2486 = vmatmul.mubr.bf16.gmra.mrb[44].mxu1 %v6289_v0  ;;  %v5182_v0 = vld [vmem:[%s7038_s3 + $0xb0] ss:$8 sps:$4 sm:$0xff]  }
  0xfc   :  { %2495 = vmatprep.mubr.bf16.mxu1 %v6297_v3  ;;  %2549 = vmatpush1.bf16.msra.mxu1 %v5143_v43 }
  0xfd   :  { %2550 = vmatprep.subr.bf16.mxu1 %v5148_v46  ;;  %3292 = vmatpush1.bf16.msra.mxu0 %v5182_v0  ;;  %v6615_v46 = vld [vmem:[%s7039_s2] sm:$0xf] }
  0xfe   :  { %v6466_v50 = vpop.f32.mrb[4].mxu1  ;;  %3293 = vmatprep.subr.bf16.mxu0 %v5187_v2 }
  0xff   :  { %v6471_v52 = vpop.f32.mrb[5].mxu1 }
 0x100   :  { %v6476_v54 = vpop.f32.mrb[6].mxu1  ;;  %2551 = vmatpush1.bf16.msra.mxu1 %v5146_v49 }
 0x101   :  { %v6478_v55 = vpop.f32.mrb[7].mxu1  ;;  %3294 = vmatpush1.bf16.msra.mxu0 %v5185_v4 }
 0x102   :  { %3295 = vmatprep.subr.bf16.mxu0 %v5190_v9 }
 0x103   :  { %2496 = vmatmul.mubr.bf16.gmra.mrb[48].mxu1 %v6324_v10 }
 0x104   :  { %2505 = vmatprep.mubr.bf16.mxu1 %v6332_v12 }
 0x105   :  { %3296 = vmatpush1.bf16.msra.mxu0 %v5188_v11 }
 0x106   :  { %v6488_v58 = vpop.f32.mrb[8].mxu1  ;;  %3297 = vmatprep.subr.bf16.mxu0 %v5193_v14 }
 0x107   :  { %v6493_v60 = vpop.f32.mrb[9].mxu1 }
 0x108   :  { %v6498_v62 = vpop.f32.mrb[10].mxu1 }
 0x109   :  { %v6500_v63 = vpop.f32.mrb[11].mxu1  ;;  %3298 = vmatpush1.bf16.msra.mxu0 %v5191_v15 }
 0x10a   :  { %3299 = vmatprep.subr.bf16.mxu0 %v5196_v17 }
 0x10b   :  { %2506 = vmatmul.mubr.bf16.gmra.mrb[52].mxu1 %v6359_v19  ;;  %v5194_v19 = vld [vmem:[%s7038_s3 + $0xf0] ss:$8 sps:$4 sm:$0xff]  }
 0x10c   :  { %2515 = vmatprep.mubr.bf16.mxu1 %v6364_v20 }
 0x10d   :  { %3300 = vmatpush1.bf16.msra.mxu0 %v5194_v19 }
 0x10e   :  { %v6510_v3 = vpop.f32.mrb[12].mxu1  ;;  %3382 = vmatprep.subr.bf16.mxu0 %v5199_v34 }
 0x10f   :  { %v6515_v5 = vpop.f32.mrb[13].mxu1 }
 0x110   :  { %v6517_v6 = vpop.f32.mrb[14].mxu1 }
 0x111   :  { %v6519_v7 = vpop.f32.mrb[15].mxu1 }
 0x113   :  { %2516 = vmatmul.mubr.bf16.gmra.mrb[56].mxu1 %v6391_v27  ;;  %v5326_v27 = vld [vmem:[%s7037_s0 + $0x50] ss:$28 sps:$4 sm:$0xff]  }
 0x114   :  { %2525 = vmatprep.mubr.bf16.mxu1 %v6402_v30 }
 0x116   :  { %v6523_v8 = vpop.f32.mrb[16].mxu1 }
 0x117   :  { %v6528_v10 = vpop.f32.mrb[17].mxu1 }
 0x118   :  { %v6533_v12 = vpop.f32.mrb[18].mxu1 }
 0x119   :  { %v6535_v13 = vpop.f32.mrb[19].mxu1 }
 0x11b   :  { %2526 = vmatmul.mubr.bf16.gmra.mrb[60].mxu1 %v6435_v39  ;;  %v317_v39 = vlaneseq }
 0x11c   :  { %2568 = vmatprep.mubr.bf16.mxu1 %v5333_v1 }
 0x11d   :  { %v6609_v41 = vshrl.u32 %v317_v39, 7 }
 0x11e   :  { %v6545_v16 = vpop.f32.mrb[20].mxu1 }
 0x11f   :  { %v6550_v18 = vpop.f32.mrb[21].mxu1  ;;  %v319_v43 = vsub.s32 0, %v6609_v41  ;;  %v323_v47 = vsub.s32 1, %v6609_v41 }
 0x120   :  { %v6555_v20 = vpop.f32.mrb[22].mxu1 }
 0x121   :  { %v6557_v21 = vpop.f32.mrb[23].mxu1  ;;  %v6626_v48 = vrot.slane %v6615_v46, %v323_v47 }
 0x123   :  { %2569 = vmatmul.mubr.bf16.vlgmr.msra.gmra.mrb[32].mxu1 %v5325_v22 }
 0x124   :  { %2578 = vmatprep.mubr.bf16.mxu1 %v5333_v1 }
 0x126   :  { %v6563_v23 = vpop.f32.mrb[24].mxu1 }
 0x127   :  { %v6565_v24 = vpop.f32.mrb[25].mxu1 }
 0x128   :  { %v6567_v25 = vpop.f32.mrb[26].mxu1 }
 0x129   :  { %v6569_v26 = vpop.f32.mrb[27].mxu1 }
 0x12b   :  { %2579 = vmatmul.mubr.bf16.gmra.mrb[36].mxu1 %v5326_v27 }
 0x12c   :  { %2588 = vmatprep.mubr.bf16.mxu1 %v5333_v1 }
 0x12e   :  { %v6575_v28 = vpop.f32.mrb[28].mxu1 }
 0x12f   :  { %v6577_v29 = vpop.f32.mrb[29].mxu1 }
 0x130   :  { %v6579_v30 = vpop.f32.mrb[30].mxu1 }
 0x131   :  { %v6581_v31 = vpop.f32.mrb[31].mxu1 }
 0x133   :  { %2589 = vmatmul.mubr.bf16.gmra.mrb[40].mxu1 %v5327_v32 }
 0x134   :  { %2598 = vmatprep.mubr.bf16.mxu1 %v5333_v1 }
 0x13b   :  { %2599 = vmatmul.mubr.bf16.gmra.mrb[44].mxu1 %v5328_v33 }
 0x13c   :  { %2608 = vmatprep.mubr.bf16.mxu1 %v5333_v1 }
 0x143   :  { %2609 = vmatmul.mubr.bf16.gmra.mrb[48].mxu1 %v5329_v35 }
 0x144   :  { %2618 = vmatprep.mubr.bf16.mxu1 %v5333_v1 }
 0x14b   :  { %2619 = vmatmul.mubr.bf16.gmra.mrb[52].mxu1 %v5330_v36 }
 0x14c   :  { %2628 = vmatprep.mubr.bf16.mxu1 %v5333_v1 }
 0x153   :  { %2629 = vmatmul.mubr.bf16.gmra.mrb[56].mxu1 %v5331_v37 }
 0x154   :  { %2638 = vmatprep.mubr.bf16.mxu1 %v5333_v1  ;;  %v6621_v1 = vrot.slane %v6615_v46, %v319_v43 }
 0x15b   :  { %2639 = vmatmul.mubr.bf16.gmra.mrb[60].mxu1 %v5332_v38 }
 0x195   :  { %v2005_v49 = vpop.f32.mrb[0].mxu0 }
 0x196   :  { %v4412_v51 = vadd.f32 %v2005_v49, %v6621_v1  ;;  %v2007_v53 = vpop.f32.mrb[1].mxu0  ;;  %v5197_v49 = vld [vmem:[%s7038_s3 + $0x100] ss:$8 sps:$4 sm:$0xff]  }
 0x197   :  { %v4414_v57 = vadd.f32 %v2007_v53, %v6626_v48  ;;  %v2009_v56 = vpop.f32.mrb[2].mxu0 }
 0x198   :  { %v4413_v59 = vadd.f32 %v4412_v51, %v6437_v40  ;;  %v4416_v61 = vadd.f32 %v2009_v56, %v6621_v1  ;;  %v2011_v0 = vpop.f32.mrb[3].mxu0 }
 0x199   :  { %v4415_v2 = vadd.f32 %v4414_v57, %v6442_v42  ;;  %v4418_v4 = vadd.f32 %v2011_v0, %v6626_v48  ;;  %v5202_v57 = vld [vmem:[%s7038_s3 + $0x114] ss:$8 sps:$4 sm:$0xff]  }
 0x19a   :  { %v2713_v9 = vmul.f32 0.2, %v4413_v59  ;;  %v4417_v11 = vadd.f32 %v4416_v61, %v6447_v44  ;;  %vm2649_vm0 = vcmp.gt.f32.partialorder %v4413_v59, 0.0 }
 0x19b   :  { %v2714_v14 = vmul.f32 0.2, %v4415_v2  ;;  %v4419_v15 = vadd.f32 %v4418_v4, %v6449_v45  ;;  %vm2650_vm1 = vcmp.gt.f32.partialorder %v4415_v2, 0.0 }
 0x19c   :  { %vm2653_vm2 = vcmp.gt.f32.partialorder %v4417_v11, 0.0  ;;  %v2717_v17 = vmul.f32 0.2, %v4417_v11  ;;  %v2777_v22 = vsel %vm2649_vm0, %v4413_v59, %v2713_v9 }
 0x19d   :  { %vm2654_vm3 = vcmp.gt.f32.partialorder %v4419_v15, 0.0  ;;  %v2718_v19 = vmul.f32 0.2, %v4419_v15  ;;  %v2015_v40 = vpop.f32.mrb[4].mxu0  ;;  %v2778_v44 = vsel %vm2650_vm1, %v4415_v2, %v2714_v14 }
 0x19e   :  { %v2781_v27 = vsel %vm2653_vm2, %v4417_v11, %v2717_v17  ;;  %v4420_v32 = vadd.f32 %v2015_v40, %v6621_v1  ;;  %v2017_v42 = vpop.f32.mrb[5].mxu0 }
 0x19f   :  { %v2841_v33 = vpack.c.bf16 %v2781_v27, %v2777_v22  ;;  %v4422_v34 = vadd.f32 %v2017_v42, %v6626_v48  ;;  %v2019_v35 = vpop.f32.mrb[6].mxu0  ;;  %v2782_v36 = vsel %vm2654_vm3, %v4419_v15, %v2718_v19 }
 0x1a0   :  { %v4421_v37 = vadd.f32 %v4420_v32, %v6466_v50  ;;  %v4424_v45 = vadd.f32 %v2019_v35, %v6621_v1  ;;  %v2021_v38 = vpop.f32.mrb[7].mxu0  ;;  %v2842_v39 = vpack.c.bf16 %v2782_v36, %v2778_v44  ;;  %v5208_v36 = vld [vmem:[%s7038_s3 + $0x134] ss:$8 sps:$4 sm:$0xff]  }
 0x1a1   :  { %v4423_v51 = vadd.f32 %v4422_v34, %v6471_v52  ;;  %v4426_v53 = vadd.f32 %v2021_v38, %v6626_v48  ;;  %v5200_v52 = vld [vmem:[%s7038_s3 + $0x110] ss:$8 sps:$4 sm:$0xff]   ;;  %v5203_v34 = vld [vmem:[%s7038_s3 + $0x120] ss:$8 sps:$4 sm:$0xff]  }
 0x1a2   :  { %v2721_v56 = vmul.f32 0.2, %v4421_v37  ;;  %v4425_v59 = vadd.f32 %v4424_v45, %v6476_v54  ;;  %3301 = vmatprep.mubr.bf16.mxu0 %v2842_v39  ;;  %vm2657_vm4 = vcmp.gt.f32.partialorder %v4421_v37, 0.0  ;;  %v5205_v54 = vld [vmem:[%s7038_s3 + $0x124] ss:$8 sps:$4 sm:$0xff]  }
 0x1a3   :  { %v2722_v50 = vmul.f32 0.2, %v4423_v51  ;;  %v4427_v61 = vadd.f32 %v4426_v53, %v6478_v55  ;;  %3302 = vmatmul.mubr.bf16.vlgmr.msra.gmra.mrb[32].mxu0 %v2841_v33  ;;  %vm2658_vm5 = vcmp.gt.f32.partialorder %v4423_v51, 0.0 }
 0x1a4   :  { %vm2661_vm6 = vcmp.gt.f32.partialorder %v4425_v59, 0.0  ;;  %v2725_v0 = vmul.f32 0.2, %v4425_v59  ;;  %3383 = vmatpush1.bf16.msra.mxu0 %v5197_v49  ;;  %v2785_v11 = vsel %vm2657_vm4, %v4421_v37, %v2721_v56 }
 0x1a5   :  { %vm2662_vm7 = vcmp.gt.f32.partialorder %v4427_v61, 0.0  ;;  %v2726_v2 = vmul.f32 0.2, %v4427_v61  ;;  %v2025_v4 = vpop.f32.mrb[8].mxu0  ;;  %3384 = vmatprep.subr.bf16.mxu0 %v5202_v57  ;;  %v2786_v19 = vsel %vm2658_vm5, %v4423_v51, %v2722_v50 }
 0x1a6   :  { %v4428_v9 = vadd.f32 %v2025_v4, %v6621_v1  ;;  %v2027_v55 = vpop.f32.mrb[9].mxu0  ;;  %v2789_v14 = vsel %vm2661_vm6, %v4425_v59, %v2725_v0 }
 0x1a7   :  { %v4430_v15 = vadd.f32 %v2027_v55, %v6626_v48  ;;  %v2029_v17 = vpop.f32.mrb[10].mxu0  ;;  %v2790_v40 = vsel %vm2662_vm7, %v4427_v61, %v2726_v2  ;;  %v2845_v22 = vpack.c.bf16 %v2789_v14, %v2785_v11  ;;  %v5209_v55 = vld [vmem:[%s7038_s3 + $0x140] ss:$8 sps:$4 sm:$0xff]  }
 0x1a8   :  { %v4429_v27 = vadd.f32 %v4428_v9, %v6488_v58  ;;  %v4432_v32 = vadd.f32 %v2029_v17, %v6621_v1  ;;  %v2031_v42 = vpop.f32.mrb[11].mxu0  ;;  %v2846_v33 = vpack.c.bf16 %v2790_v40, %v2786_v19  ;;  %3385 = vmatpush1.bf16.msra.mxu0 %v5200_v52 }
 0x1a9   :  { %v4431_v35 = vadd.f32 %v4430_v15, %v6493_v60  ;;  %v4434_v44 = vadd.f32 %v2031_v42, %v6626_v48  ;;  %3386 = vmatprep.subr.bf16.mxu0 %v5205_v54  ;;  %v5206_v60 = vld [vmem:[%s7038_s3 + $0x130] ss:$8 sps:$4 sm:$0xff]   ;;  %v5214_v15 = vld [vmem:[%s7038_s3 + $0x154] ss:$8 sps:$4 sm:$0xff]  }
 0x1aa   :  { %v2729_v37 = vmul.f32 0.2, %v4429_v27  ;;  %v4433_v58 = vadd.f32 %v4432_v32, %v6498_v62  ;;  %3311 = vmatprep.mubr.bf16.mxu0 %v2846_v33  ;;  %vm2665_vm8 = vcmp.gt.f32.partialorder %v4429_v27, 0.0  ;;  %v5211_v62 = vld [vmem:[%s7038_s3 + $0x144] ss:$8 sps:$4 sm:$0xff]  }
 0x1ab   :  { %v2730_v45 = vmul.f32 0.2, %v4431_v35  ;;  %v4435_v38 = vadd.f32 %v4434_v44, %v6500_v63  ;;  %3312 = vmatmul.mubr.bf16.gmra.mrb[36].mxu0 %v2845_v22  ;;  %vm2666_vm9 = vcmp.gt.f32.partialorder %v4431_v35, 0.0 }
 0x1ac   :  { %vm2669_vm10 = vcmp.gt.f32.partialorder %v4433_v58, 0.0  ;;  %v2733_v39 = vmul.f32 0.2, %v4433_v58  ;;  %3387 = vmatpush1.bf16.msra.mxu0 %v5203_v34  ;;  %v2793_v57 = vsel %vm2665_vm8, %v4429_v27, %v2729_v37 }
 0x1ad   :  { %vm2670_vm11 = vcmp.gt.f32.partialorder %v4435_v38, 0.0  ;;  %v2734_v49 = vmul.f32 0.2, %v4435_v38  ;;  %v2035_v51 = vpop.f32.mrb[12].mxu0  ;;  %3388 = vmatprep.subr.bf16.mxu0 %v5208_v36  ;;  %v2794_v61 = vsel %vm2666_vm9, %v4431_v35, %v2730_v45 }
 0x1ae   :  { %v4436_v53 = vadd.f32 %v2035_v51, %v6621_v1  ;;  %v2037_v63 = vpop.f32.mrb[13].mxu0  ;;  %v2797_v56 = vsel %vm2669_vm10, %v4433_v58, %v2733_v39 }
 0x1af   :  { %v4438_v59 = vadd.f32 %v2037_v63, %v6626_v48  ;;  %v2039_v50 = vpop.f32.mrb[14].mxu0  ;;  %v2798_v0 = vsel %vm2670_vm11, %v4435_v38, %v2734_v49  ;;  %v2849_v52 = vpack.c.bf16 %v2797_v56, %v2793_v57  ;;  %v5215_v49 = vld [vmem:[%s7038_s3 + $0x160] ss:$8 sps:$4 sm:$0xff]   ;;  %v5218_v57 = vld [vmem:[%s7038_s3 + $0x170] ss:$8 sps:$4 sm:$0xff]  }
 0x1b0   :  { %v4437_v2 = vadd.f32 %v4436_v53, %v6510_v3  ;;  %v4440_v4 = vadd.f32 %v2039_v50, %v6621_v1  ;;  %v2041_v54 = vpop.f32.mrb[15].mxu0  ;;  %v2850_v9 = vpack.c.bf16 %v2798_v0, %v2794_v61  ;;  %3389 = vmatpush1.bf16.msra.mxu0 %v5206_v60  ;;  %v5220_v53 = vld [vmem:[%s7038_s3 + $0x174] ss:$8 sps:$4 sm:$0xff]   ;;  %v5223_v50 = vld [vmem:[%s7038_s3 + $0x184] ss:$8 sps:$4 sm:$0xff]  }
 0x1b1   :  { %v4439_v11 = vadd.f32 %v4438_v59, %v6515_v5  ;;  %v4442_v14 = vadd.f32 %v2041_v54, %v6626_v48  ;;  %3390 = vmatprep.subr.bf16.mxu0 %v5211_v62  ;;  %v5212_v5 = vld [vmem:[%s7038_s3 + $0x150] ss:$8 sps:$4 sm:$0xff]   ;;  %v6736_v0 = vld [vmem:[%s7040_s5 + $0x48] sm:$0xff]  }
 0x1b2   :  { %v2737_v17 = vmul.f32 0.2, %v4437_v2  ;;  %v4441_v3 = vadd.f32 %v4440_v4, %v6517_v6  ;;  %3321 = vmatprep.mubr.bf16.mxu0 %v2850_v9  ;;  %vm2673_vm12 = vcmp.gt.f32.partialorder %v4437_v2, 0.0  ;;  %v5217_v6 = vld [vmem:[%s7038_s3 + $0x164] ss:$8 sps:$4 sm:$0xff]  }
 0x1b3   :  { %v2738_v19 = vmul.f32 0.2, %v4439_v11  ;;  %v4443_v40 = vadd.f32 %v4442_v14, %v6519_v7  ;;  %3322 = vmatmul.mubr.bf16.gmra.mrb[40].mxu0 %v2849_v52  ;;  %vm2674_vm13 = vcmp.gt.f32.partialorder %v4439_v11, 0.0 }
 0x1b4   :  { %vm2677_vm14 = vcmp.gt.f32.partialorder %v4441_v3, 0.0  ;;  %v2741_v22 = vmul.f32 0.2, %v4441_v3  ;;  %3391 = vmatpush1.bf16.msra.mxu0 %v5209_v55  ;;  %v2801_v33 = vsel %vm2673_vm12, %v4437_v2, %v2737_v17  ;;  %v5221_v55 = vld [vmem:[%s7038_s3 + $0x180] ss:$8 sps:$4 sm:$0xff]  }
 0x1b5   :  { %vm2678_vm15 = vcmp.gt.f32.partialorder %v4443_v40, 0.0  ;;  %v2742_v27 = vmul.f32 0.2, %v4443_v40  ;;  %v2045_v32 = vpop.f32.mrb[16].mxu0  ;;  %3392 = vmatprep.subr.bf16.mxu0 %v5214_v15  ;;  %v2802_v36 = vsel %vm2674_vm13, %v4439_v11, %v2738_v19  ;;  %v5226_v19 = vld [vmem:[%s7038_s3 + $0x194] ss:$8 sps:$4 sm:$0xff]  }
 0x1b6   :  { %v4444_v42 = vadd.f32 %v2045_v32, %v6621_v1  ;;  %v2047_v7 = vpop.f32.mrb[17].mxu0  ;;  %v2805_v34 = vsel %vm2677_vm14, %v4441_v3, %v2741_v22 }
 0x1b7   :  { %v4446_v35 = vadd.f32 %v2047_v7, %v6626_v48  ;;  %v2049_v44 = vpop.f32.mrb[18].mxu0  ;;  %v2806_v37 = vsel %vm2678_vm15, %v4443_v40, %v2742_v27  ;;  %v2853_v58 = vpack.c.bf16 %v2805_v34, %v2801_v33  ;;  %v6753_v40 = vld [vmem:[%s7040_s5 + $0x8] sm:$0xff]   ;;  %v5224_v34 = vld [vmem:[%s7038_s3 + $0x190] ss:$8 sps:$4 sm:$0xff]  }
 0x1b8   :  { %v4445_v45 = vadd.f32 %v4444_v42, %v6523_v8  ;;  %v4448_v38 = vadd.f32 %v2049_v44, %v6621_v1  ;;  %v2051_v39 = vpop.f32.mrb[19].mxu0  ;;  %v2854_v60 = vpack.c.bf16 %v2806_v37, %v2802_v36  ;;  %3393 = vmatpush1.bf16.msra.mxu0 %v5212_v5  ;;  %v6782_v36 = vld [vmem:[%s7040_s5 + $0x58] sm:$0xff]  }
 0x1b9   :  { %v4447_v51 = vadd.f32 %v4446_v35, %v6528_v10  ;;  %v4450_v62 = vadd.f32 %v2051_v39, %v6626_v48  ;;  %3394 = vmatprep.subr.bf16.mxu0 %v5217_v6  ;;  %v6721_v10 = vld [vmem:[%s7040_s5 + $0x40] sm:$0xff]   ;;  %v6760_v6 = vld [vmem:[%s7040_s5 + $0x50] sm:$0xff]  }
 0x1ba   :  { %vm2681_vm0 = vcmp.gt.f32.partialorder %v4445_v45, 0.0  ;;  %v2745_v8 = vmul.f32 0.2, %v4445_v45  ;;  %v4449_v63 = vadd.f32 %v4448_v38, %v6533_v12  ;;  %3331 = vmatprep.mubr.bf16.mxu0 %v2854_v60  ;;  %v6730_v12 = vld [vmem:[%s7040_s5] sm:$0xff]   ;;  %4396 = vmatprep.subr.bf16.mxu1 %v6721_v10  ;;  %v6773_v35 = vld [vmem:[%s7040_s5 + $0x10] sm:$0xff]  }
 0x1bb   :  { %vm2682_vm1 = vcmp.gt.f32.partialorder %v4447_v51, 0.0  ;;  %v2746_v56 = vmul.f32 0.2, %v4447_v51  ;;  %v4451_v59 = vadd.f32 %v4450_v62, %v6535_v13  ;;  %3332 = vmatmul.mubr.bf16.gmra.mrb[44].mxu0 %v2853_v58  ;;  %4404 = vmatpush3.bf16.msra.mxu1 %v6730_v12 }
 0x1bc   :  { %vm2685_vm2 = vcmp.gt.f32.partialorder %v4449_v63, 0.0  ;;  %v2749_v61 = vmul.f32 0.2, %v4449_v63  ;;  %3395 = vmatpush1.bf16.msra.mxu0 %v5215_v49  ;;  %v2809_v54 = vsel %vm2681_vm0, %v4445_v45, %v2745_v8  ;;  %4397 = vmatprep.subr.bf16.mxu1 %v6736_v0  ;;  %v5227_v49 = vld [vmem:[%s7038_s3 + $0x1a0] ss:$8 sps:$4 sm:$0xff]  }
 0x1bd   :  { %vm2686_vm3 = vcmp.gt.f32.partialorder %v4451_v59, 0.0  ;;  %v2750_v13 = vmul.f32 0.2, %v4451_v59  ;;  %v2055_v52 = vpop.f32.mrb[20].mxu0  ;;  %3396 = vmatprep.subr.bf16.mxu0 %v5220_v53  ;;  %v2810_v15 = vsel %vm2682_vm1, %v4447_v51, %v2746_v56  ;;  %v6799_v56 = vld [vmem:[%s7040_s5 + $0x18] sm:$0xff]  }
 0x1be   :  { %v4452_v2 = vadd.f32 %v2055_v52, %v6621_v1  ;;  %v2057_v4 = vpop.f32.mrb[21].mxu0  ;;  %v2813_v9 = vsel %vm2685_vm2, %v4449_v63, %v2749_v61  ;;  %v6806_v52 = vld [vmem:[%s7040_s5 + $0x60] sm:$0xff]  }
 0x1bf   :  { %v4454_v11 = vadd.f32 %v2057_v4, %v6626_v48  ;;  %v2059_v14 = vpop.f32.mrb[22].mxu0  ;;  %v2814_v17 = vsel %vm2686_vm3, %v4451_v59, %v2750_v13  ;;  %v2857_v3 = vpack.c.bf16 %v2813_v9, %v2809_v54  ;;  %4405 = vmatpush3.bf16.msra.mxu1 %v6753_v40  ;;  %v5230_v9 = vld [vmem:[%s7038_s3 + $0x1b0] ss:$8 sps:$4 sm:$0xff]  }
 0x1c0   :  { %v4453_v22 = vadd.f32 %v4452_v2, %v6545_v16  ;;  %v4456_v5 = vadd.f32 %v2059_v14, %v6621_v1  ;;  %v2061_v27 = vpop.f32.mrb[23].mxu0  ;;  %v2858_v32 = vpack.c.bf16 %v2814_v17, %v2810_v15  ;;  %3397 = vmatpush1.bf16.msra.mxu0 %v5218_v57  ;;  %4398 = vmatprep.subr.bf16.mxu1 %v6760_v6  ;;  %v5232_v57 = vld [vmem:[%s7038_s3 + $0x1b4] ss:$8 sps:$4 sm:$0xff]  }
 0x1c1   :  { %v4455_v42 = vadd.f32 %v4454_v11, %v6550_v18  ;;  %v4458_v7 = vadd.f32 %v2061_v27, %v6626_v48  ;;  %3398 = vmatprep.subr.bf16.mxu0 %v5223_v50 }
 0x1c2   :  { %v2753_v33 = vmul.f32 0.2, %v4453_v22  ;;  %v4457_v16 = vadd.f32 %v4456_v5, %v6555_v20  ;;  %3341 = vmatprep.mubr.bf16.mxu0 %v2858_v32  ;;  %vm2689_vm4 = vcmp.gt.f32.partialorder %v4453_v22, 0.0  ;;  %v5229_v20 = vld [vmem:[%s7038_s3 + $0x1a4] ss:$8 sps:$4 sm:$0xff]  }
 0x1c3   :  { %v2754_v18 = vmul.f32 0.2, %v4455_v42  ;;  %v4459_v44 = vadd.f32 %v4458_v7, %v6557_v21  ;;  %3342 = vmatmul.mubr.bf16.gmra.mrb[48].mxu0 %v2857_v3  ;;  %vm2690_vm5 = vcmp.gt.f32.partialorder %v4455_v42, 0.0  ;;  %4406 = vmatpush3.bf16.msra.mxu1 %v6773_v35 }
 0x1c4   :  { %vm2693_vm6 = vcmp.gt.f32.partialorder %v4457_v16, 0.0  ;;  %v2757_v37 = vmul.f32 0.2, %v4457_v16  ;;  %3399 = vmatpush1.bf16.msra.mxu0 %v5221_v55  ;;  %v2817_v39 = vsel %vm2689_vm4, %v4453_v22, %v2753_v33  ;;  %4399 = vmatprep.subr.bf16.mxu1 %v6782_v36 }
 0x1c5   :  { %vm2694_vm7 = vcmp.gt.f32.partialorder %v4459_v44, 0.0  ;;  %v2758_v58 = vmul.f32 0.2, %v4459_v44  ;;  %v2065_v45 = vpop.f32.mrb[24].mxu0  ;;  %3400 = vmatprep.subr.bf16.mxu0 %v5226_v19  ;;  %v2818_v53 = vsel %vm2690_vm5, %v4455_v42, %v2754_v18 }
 0x1c6   :  { %v4460_v21 = vadd.f32 %v2065_v45, %v6621_v1  ;;  %v2067_v38 = vpop.f32.mrb[25].mxu0  ;;  %v2821_v60 = vsel %vm2693_vm6, %v4457_v16, %v2757_v37 }
 0x1c7   :  { %v4462_v51 = vadd.f32 %v2067_v38, %v6626_v48  ;;  %v2069_v62 = vpop.f32.mrb[26].mxu0  ;;  %v2822_v8 = vsel %vm2694_vm7, %v4459_v44, %v2758_v58  ;;  %v2861_v63 = vpack.c.bf16 %v2821_v60, %v2817_v39  ;;  %4407 = vmatpush3.bf16.msra.mxu1 %v6799_v56  ;;  %v5233_v44 = vld [vmem:[%s7038_s3 + $0x1c0] ss:$8 sps:$4 sm:$0xff]   ;;  %v5238_v58 = vld [vmem:[%s7038_s3 + $0x1d4] ss:$8 sps:$4 sm:$0xff]  }
 0x1c8   :  { %v4461_v59 = vadd.f32 %v4460_v21, %v6563_v23  ;;  %v4464_v50 = vadd.f32 %v2069_v62, %v6621_v1  ;;  %v2071_v61 = vpop.f32.mrb[27].mxu0  ;;  %v2862_v13 = vpack.c.bf16 %v2822_v8, %v2818_v53  ;;  %3401 = vmatpush1.bf16.msra.mxu0 %v5224_v34  ;;  %4400 = vmatprep.subr.bf16.mxu1 %v6806_v52  ;;  %v5239_v53 = vld [vmem:[%s7038_s3 + $0x1e0] ss:$8 sps:$4 sm:$0xff]   ;;  %v5244_v8 = vld [vmem:[%s7038_s3 + $0x1f4] ss:$8 sps:$4 sm:$0xff]  }
 0x1c9   :  { %v4463_v2 = vadd.f32 %v4462_v51, %v6565_v24  ;;  %v4466_v4 = vadd.f32 %v2071_v61, %v6626_v48  ;;  %3402 = vmatprep.subr.bf16.mxu0 %v5229_v20  ;;  %v5235_v24 = vld [vmem:[%s7038_s3 + $0x1c4] ss:$8 sps:$4 sm:$0xff]  }
 0x1ca   :  { %v2761_v54 = vmul.f32 0.2, %v4461_v59  ;;  %v4465_v23 = vadd.f32 %v4464_v50, %v6567_v25  ;;  %3351 = vmatprep.mubr.bf16.mxu0 %v2862_v13  ;;  %vm2697_vm8 = vcmp.gt.f32.partialorder %v4461_v59, 0.0  ;;  %v6823_v25 = vld [vmem:[%s7040_s5 + $0x20] sm:$0xff]  }
 0x1cb   :  { %v2762_v55 = vmul.f32 0.2, %v4463_v2  ;;  %v4467_v11 = vadd.f32 %v4466_v4, %v6569_v26  ;;  %3352 = vmatmul.mubr.bf16.gmra.mrb[52].mxu0 %v2861_v63  ;;  %vm2698_vm9 = vcmp.gt.f32.partialorder %v4463_v2, 0.0  ;;  %4408 = vmatpush3.bf16.msra.mxu1 %v6823_v25  ;;  %v5242_v63 = vld [vmem:[%s7038_s3 + $0x1f0] ss:$8 sps:$4 sm:$0xff]  }
 0x1cc   :  { %vm2701_vm10 = vcmp.gt.f32.partialorder %v4465_v23, 0.0  ;;  %v2765_v14 = vmul.f32 0.2, %v4465_v23  ;;  %3403 = vmatpush1.bf16.msra.mxu0 %v5227_v49  ;;  %v2825_v19 = vsel %vm2697_vm8, %v4461_v59, %v2761_v54  ;;  %v331_v59 = vsub.s32 3, %v6609_v41 }
 0x1cd   :  { %vm2702_vm11 = vcmp.gt.f32.partialorder %v4467_v11, 0.0  ;;  %v2766_v15 = vmul.f32 0.2, %v4467_v11  ;;  %v2075_v17 = vpop.f32.mrb[28].mxu0  ;;  %3404 = vmatprep.subr.bf16.mxu0 %v5232_v57  ;;  %v2826_v32 = vsel %vm2698_vm9, %v4463_v2, %v2762_v55  ;;  %v327_v57 = vsub.s32 2, %v6609_v41 }
 0x1ce   :  { %v4468_v26 = vadd.f32 %v2075_v17, %v6621_v1  ;;  %v2077_v3 = vpop.f32.mrb[29].mxu0  ;;  %v2829_v22 = vsel %vm2701_vm10, %v4465_v23, %v2765_v14  ;;  %v6863_v61 = vrot.slane %v6615_v46, %v331_v59 }
 0x1cf   :  { %v4470_v5 = vadd.f32 %v2077_v3, %v6626_v48  ;;  %v2079_v27 = vpop.f32.mrb[30].mxu0  ;;  %v2830_v42 = vsel %vm2702_vm11, %v4467_v11, %v2766_v15  ;;  %v2865_v7 = vpack.c.bf16 %v2829_v22, %v2825_v19  ;;  %v6860_v50 = vrot.slane %v6615_v46, %v327_v57 }
 0x1d0   :  { %v4469_v33 = vadd.f32 %v4468_v26, %v6575_v28  ;;  %v4472_v16 = vadd.f32 %v2079_v27, %v6621_v1  ;;  %v2081_v34 = vpop.f32.mrb[31].mxu0  ;;  %v2866_v18 = vpack.c.bf16 %v2830_v42, %v2826_v32  ;;  %3405 = vmatpush1.bf16.msra.mxu0 %v5230_v9 }
 0x1d1   :  { %v4471_v20 = vadd.f32 %v4470_v5, %v6577_v29  ;;  %v4474_v37 = vadd.f32 %v2081_v34, %v6626_v48  ;;  %3406 = vmatprep.subr.bf16.mxu0 %v5235_v24  ;;  %v5236_v29 = vld [vmem:[%s7038_s3 + $0x1d0] ss:$8 sps:$4 sm:$0xff]  }
 0x1d2   :  { %v2769_v45 = vmul.f32 0.2, %v4469_v33  ;;  %v4473_v28 = vadd.f32 %v4472_v16, %v6579_v30  ;;  %3361 = vmatprep.mubr.bf16.mxu0 %v2866_v18  ;;  %vm2705_vm12 = vcmp.gt.f32.partialorder %v4469_v33, 0.0  ;;  %v5241_v30 = vld [vmem:[%s7038_s3 + $0x1e4] ss:$8 sps:$4 sm:$0xff]  }
 0x1d3   :  { %v2770_v1 = vmul.f32 0.2, %v4471_v20  ;;  %v4475_v21 = vadd.f32 %v4474_v37, %v6581_v31  ;;  %3362 = vmatmul.mubr.bf16.gmra.mrb[56].mxu0 %v2865_v7  ;;  %vm2706_vm13 = vcmp.gt.f32.partialorder %v4471_v20, 0.0 }
 0x1d4   :  { %vm2709_vm14 = vcmp.gt.f32.partialorder %v4473_v28, 0.0  ;;  %v2773_v38 = vmul.f32 0.2, %v4473_v28  ;;  %3407 = vmatpush1.bf16.msra.mxu0 %v5233_v44  ;;  %v2833_v39 = vsel %vm2705_vm12, %v4469_v33, %v2769_v45 }
 0x1d5   :  { %vm2710_vm15 = vcmp.gt.f32.partialorder %v4475_v21, 0.0  ;;  %v2774_v48 = vmul.f32 0.2, %v4475_v21  ;;  %3408 = vmatprep.subr.bf16.mxu0 %v5238_v58  ;;  %v2834_v49 = vsel %vm2706_vm13, %v4471_v20, %v2770_v1 }
 0x1d6   :  { %v2837_v60 = vsel %vm2709_vm14, %v4473_v28, %v2773_v38 }
 0x1d7   :  { %v2838_v31 = vsel %vm2710_vm15, %v4475_v21, %v2774_v48  ;;  %v2869_v51 = vpack.c.bf16 %v2837_v60, %v2833_v39 }
 0x1d8   :  { %v2870_v62 = vpack.c.bf16 %v2838_v31, %v2834_v49  ;;  %3409 = vmatpush1.bf16.msra.mxu0 %v5236_v29 }
 0x1d9   :  { %3410 = vmatprep.subr.bf16.mxu0 %v5241_v30 }
 0x1da   :  { %3371 = vmatprep.mubr.bf16.mxu0 %v2870_v62 }
 0x1db   :  { %3372 = vmatmul.mubr.bf16.gmra.mrb[60].mxu0 %v2869_v51 }
 0x1dc   :  { %3411 = vmatpush1.bf16.msra.mxu0 %v5239_v53 }
 0x1dd   :  { %3412 = vmatprep.subr.bf16.mxu0 %v5244_v8 }
 0x1e0   :  { %3413 = vmatpush1.bf16.msra.mxu0 %v5242_v63 }
 0x1e1   :  { %4332 = vmatprep.subr.bf16.mxu0 %v6721_v10 }
 0x1f6   :  { %v2570_v13 = vpop.f32.mrb[32].mxu1 }
 0x1f7   :  { %v4476_v2 = vadd.f32 %v2570_v13, %v6860_v50  ;;  %v2572_v4 = vpop.f32.mrb[33].mxu1 }
 0x1f8   :  { %v4477_v54 = vadd.f32 %v2572_v4, %v6863_v61  ;;  %v2574_v23 = vpop.f32.mrb[34].mxu1 }
 0x1f9   :  { %v2715_v9 = vmul.f32 0.2, %v4476_v2  ;;  %v4478_v10 = vadd.f32 %v2574_v23, %v6860_v50  ;;  %v2576_v55 = vpop.f32.mrb[35].mxu1  ;;  %vm2651_vm0 = vcmp.gt.f32.partialorder %v4476_v2, 0.0 }
 0x1fa   :  { %v2716_v11 = vmul.f32 0.2, %v4477_v54  ;;  %v4479_v24 = vadd.f32 %v2576_v55, %v6863_v61  ;;  %vm2652_vm1 = vcmp.gt.f32.partialorder %v4477_v54, 0.0 }
 0x1fb   :  { %vm2655_vm2 = vcmp.gt.f32.partialorder %v4478_v10, 0.0  ;;  %v2719_v14 = vmul.f32 0.2, %v4478_v10  ;;  %v2779_v15 = vsel %vm2651_vm0, %v4476_v2, %v2715_v9 }
 0x1fc   :  { %vm2656_vm3 = vcmp.gt.f32.partialorder %v4479_v24, 0.0  ;;  %v2720_v46 = vmul.f32 0.2, %v4479_v24  ;;  %v2780_v19 = vsel %vm2652_vm1, %v4477_v54, %v2716_v11 }
 0x1fd   :  { %v2783_v17 = vsel %vm2655_vm2, %v4478_v10, %v2719_v14 }
 0x1fe   :  { %v2843_v26 = vpack.c.bf16 %v2783_v17, %v2779_v15  ;;  %v2580_v3 = vpop.f32.mrb[36].mxu1  ;;  %v2784_v22 = vsel %vm2656_vm3, %v4479_v24, %v2720_v46 }
 0x1ff   :  { %v4480_v5 = vadd.f32 %v2580_v3, %v6860_v50  ;;  %v2582_v27 = vpop.f32.mrb[37].mxu1  ;;  %v2844_v32 = vpack.c.bf16 %v2784_v22, %v2780_v19 }
 0x200   :  { %v4481_v42 = vadd.f32 %v2582_v27, %v6863_v61  ;;  %v2584_v7 = vpop.f32.mrb[38].mxu1 }
 0x201   :  { %v2723_v33 = vmul.f32 0.2, %v4480_v5  ;;  %v4482_v16 = vadd.f32 %v2584_v7, %v6860_v50  ;;  %v2586_v34 = vpop.f32.mrb[39].mxu1  ;;  %3414 = vmatprep.mubr.bf16.mxu0 %v2844_v32  ;;  %vm2659_vm4 = vcmp.gt.f32.partialorder %v4480_v5, 0.0 }
 0x202   :  { %v2724_v18 = vmul.f32 0.2, %v4481_v42  ;;  %v4483_v44 = vadd.f32 %v2586_v34, %v6863_v61  ;;  %3415 = vmatmul.mubr.bf16.vlgmr.msra.gmra.mrb[32].mxu0 %v2843_v26  ;;  %vm2660_vm5 = vcmp.gt.f32.partialorder %v4481_v42, 0.0 }
 0x203   :  { %vm2663_vm6 = vcmp.gt.f32.partialorder %v4482_v16, 0.0  ;;  %v2727_v20 = vmul.f32 0.2, %v4482_v16  ;;  %4333 = vmatpush3.bf16.msra.mxu0 %v6730_v12  ;;  %v2787_v58 = vsel %vm2659_vm4, %v4480_v5, %v2723_v33 }
 0x204   :  { %vm2664_vm7 = vcmp.gt.f32.partialorder %v4483_v44, 0.0  ;;  %v2728_v37 = vmul.f32 0.2, %v4483_v44  ;;  %4334 = vmatprep.subr.bf16.mxu0 %v6736_v0  ;;  %v2788_v1 = vsel %vm2660_vm5, %v4481_v42, %v2724_v18 }
 0x205   :  { %v2791_v45 = vsel %vm2663_vm6, %v4482_v16, %v2727_v20 }
 0x206   :  { %v2590_v28 = vpop.f32.mrb[40].mxu1  ;;  %v2792_v21 = vsel %vm2664_vm7, %v4483_v44, %v2728_v37  ;;  %v2847_v38 = vpack.c.bf16 %v2791_v45, %v2787_v58 }
 0x207   :  { %v4484_v29 = vadd.f32 %v2590_v28, %v6860_v50  ;;  %v2592_v48 = vpop.f32.mrb[41].mxu1  ;;  %v2848_v30 = vpack.c.bf16 %v2792_v21, %v2788_v1  ;;  %4335 = vmatpush3.bf16.msra.mxu0 %v6753_v40 }
 0x208   :  { %v4485_v39 = vadd.f32 %v2592_v48, %v6863_v61  ;;  %v2594_v60 = vpop.f32.mrb[42].mxu1  ;;  %4336 = vmatprep.subr.bf16.mxu0 %v6760_v6 }
 0x209   :  { %v2731_v12 = vmul.f32 0.2, %v4484_v29  ;;  %v4486_v0 = vadd.f32 %v2594_v60, %v6860_v50  ;;  %v2596_v49 = vpop.f32.mrb[43].mxu1  ;;  %3424 = vmatprep.mubr.bf16.mxu0 %v2848_v30  ;;  %vm2667_vm8 = vcmp.gt.f32.partialorder %v4484_v29, 0.0 }
 0x20a   :  { %v2732_v31 = vmul.f32 0.2, %v4485_v39  ;;  %v4487_v51 = vadd.f32 %v2596_v49, %v6863_v61  ;;  %3425 = vmatmul.mubr.bf16.gmra.mrb[36].mxu0 %v2847_v38  ;;  %vm2668_vm9 = vcmp.gt.f32.partialorder %v4485_v39, 0.0 }
 0x20b   :  { %vm2671_vm10 = vcmp.gt.f32.partialorder %v4486_v0, 0.0  ;;  %v2735_v62 = vmul.f32 0.2, %v4486_v0  ;;  %4337 = vmatpush3.bf16.msra.mxu0 %v6773_v35  ;;  %v2795_v6 = vsel %vm2667_vm8, %v4484_v29, %v2731_v12 }
 0x20c   :  { %vm2672_vm11 = vcmp.gt.f32.partialorder %v4487_v51, 0.0  ;;  %v2736_v40 = vmul.f32 0.2, %v4487_v51  ;;  %4338 = vmatprep.subr.bf16.mxu0 %v6782_v36  ;;  %v2796_v63 = vsel %vm2668_vm9, %v4485_v39, %v2732_v31 }
 0x20d   :  { %v2799_v53 = vsel %vm2671_vm10, %v4486_v0, %v2735_v62 }
 0x20e   :  { %v2600_v8 = vpop.f32.mrb[44].mxu1  ;;  %v2800_v57 = vsel %vm2672_vm11, %v4487_v51, %v2736_v40  ;;  %v2851_v59 = vpack.c.bf16 %v2799_v53, %v2795_v6 }
 0x20f   :  { %v4488_v13 = vadd.f32 %v2600_v8, %v6860_v50  ;;  %v2602_v2 = vpop.f32.mrb[45].mxu1  ;;  %v2852_v4 = vpack.c.bf16 %v2800_v57, %v2796_v63  ;;  %4339 = vmatpush3.bf16.msra.mxu0 %v6799_v56 }
 0x210   :  { %v4489_v54 = vadd.f32 %v2602_v2, %v6863_v61  ;;  %v2604_v23 = vpop.f32.mrb[46].mxu1  ;;  %4340 = vmatprep.subr.bf16.mxu0 %v6806_v52 }
 0x211   :  { %v2739_v35 = vmul.f32 0.2, %v4488_v13  ;;  %v4490_v36 = vadd.f32 %v2604_v23, %v6860_v50  ;;  %v2606_v9 = vpop.f32.mrb[47].mxu1  ;;  %3434 = vmatprep.mubr.bf16.mxu0 %v2852_v4  ;;  %vm2675_vm12 = vcmp.gt.f32.partialorder %v4488_v13, 0.0 }
 0x212   :  { %v2740_v10 = vmul.f32 0.2, %v4489_v54  ;;  %v4491_v55 = vadd.f32 %v2606_v9, %v6863_v61  ;;  %3435 = vmatmul.mubr.bf16.gmra.mrb[40].mxu0 %v2851_v59  ;;  %vm2676_vm13 = vcmp.gt.f32.partialorder %v4489_v54, 0.0 }
 0x213   :  { %vm2679_vm14 = vcmp.gt.f32.partialorder %v4490_v36, 0.0  ;;  %v2743_v11 = vmul.f32 0.2, %v4490_v36  ;;  %4341 = vmatpush3.bf16.msra.mxu0 %v6823_v25  ;;  %v2803_v24 = vsel %vm2675_vm12, %v4488_v13, %v2739_v35 }
 0x214   :  { %vm2680_vm15 = vcmp.gt.f32.partialorder %v4491_v55, 0.0  ;;  %v2744_v56 = vmul.f32 0.2, %v4491_v55  ;;  %v2804_v46 = vsel %vm2676_vm13, %v4489_v54, %v2740_v10 }
 0x215   :  { %v2807_v14 = vsel %vm2679_vm14, %v4490_v36, %v2743_v11 }
 0x216   :  { %v2610_v52 = vpop.f32.mrb[48].mxu1  ;;  %v2808_v15 = vsel %vm2680_vm15, %v4491_v55, %v2744_v56  ;;  %v2855_v17 = vpack.c.bf16 %v2807_v14, %v2803_v24 }
 0x217   :  { %v4492_v26 = vadd.f32 %v2610_v52, %v6860_v50  ;;  %v2612_v3 = vpop.f32.mrb[49].mxu1  ;;  %v2856_v19 = vpack.c.bf16 %v2808_v15, %v2804_v46 }
 0x218   :  { %v4493_v22 = vadd.f32 %v2612_v3, %v6863_v61  ;;  %v2614_v5 = vpop.f32.mrb[50].mxu1 }
 0x219   :  { %v2747_v27 = vmul.f32 0.2, %v4492_v26  ;;  %v4494_v32 = vadd.f32 %v2614_v5, %v6860_v50  ;;  %v2616_v42 = vpop.f32.mrb[51].mxu1  ;;  %3444 = vmatprep.mubr.bf16.mxu0 %v2856_v19  ;;  %vm2683_vm0 = vcmp.gt.f32.partialorder %v4492_v26, 0.0 }
 0x21a   :  { %v2748_v25 = vmul.f32 0.2, %v4493_v22  ;;  %v4495_v7 = vadd.f32 %v2616_v42, %v6863_v61  ;;  %3445 = vmatmul.mubr.bf16.gmra.mrb[44].mxu0 %v2855_v17  ;;  %vm2684_vm1 = vcmp.gt.f32.partialorder %v4493_v22, 0.0 }
 0x21b   :  { %vm2687_vm2 = vcmp.gt.f32.partialorder %v4494_v32, 0.0  ;;  %v2751_v33 = vmul.f32 0.2, %v4494_v32  ;;  %v2811_v34 = vsel %vm2683_vm0, %v4492_v26, %v2747_v27 }
 0x21c   :  { %vm2688_vm3 = vcmp.gt.f32.partialorder %v4495_v7, 0.0  ;;  %v2752_v16 = vmul.f32 0.2, %v4495_v7  ;;  %v2812_v20 = vsel %vm2684_vm1, %v4493_v22, %v2748_v25 }
 0x21d   :  { %v2815_v18 = vsel %vm2687_vm2, %v4494_v32, %v2751_v33 }
 0x21e   :  { %v2620_v44 = vpop.f32.mrb[52].mxu1  ;;  %v2816_v37 = vsel %vm2688_vm3, %v4495_v7, %v2752_v16  ;;  %v2859_v58 = vpack.c.bf16 %v2815_v18, %v2811_v34  ;;  %v5257_v18 = vld [vmem:[%s7040_s5 + $0x70] sm:$0xff]  }
 0x21f   :  { %v4496_v45 = vadd.f32 %v2620_v44, %v6860_v50  ;;  %v2622_v28 = vpop.f32.mrb[53].mxu1  ;;  %v2860_v1 = vpack.c.bf16 %v2816_v37, %v2812_v20  ;;  %v5258_v44 = vld [vmem:[%s7040_s5 + $0x30] sm:$0xff]   ;;  %v5259_v20 = vld [vmem:[%s7040_s5 + $0x78] sm:$0xff]  }
 0x220   :  { %v4497_v21 = vadd.f32 %v2622_v28, %v6863_v61  ;;  %v2624_v38 = vpop.f32.mrb[54].mxu1  ;;  %v5260_v37 = vld [vmem:[%s7040_s5 + $0x38] sm:$0xff]  }
 0x221   :  { %v2755_v29 = vmul.f32 0.2, %v4496_v45  ;;  %v4498_v48 = vadd.f32 %v2624_v38, %v6860_v50  ;;  %v2626_v30 = vpop.f32.mrb[55].mxu1  ;;  %3454 = vmatprep.mubr.bf16.mxu0 %v2860_v1  ;;  %vm2691_vm4 = vcmp.gt.f32.partialorder %v4496_v45, 0.0 }
 0x222   :  { %v2756_v39 = vmul.f32 0.2, %v4497_v21  ;;  %v4499_v60 = vadd.f32 %v2626_v30, %v6863_v61  ;;  %3455 = vmatmul.mubr.bf16.gmra.mrb[48].mxu0 %v2859_v58  ;;  %vm2692_vm5 = vcmp.gt.f32.partialorder %v4497_v21, 0.0  ;;  %v2937_v58 = vld [vmem:[%s7041_s4] sm:$0x3] }
 0x223   :  { %vm2695_vm6 = vcmp.gt.f32.partialorder %v4498_v48, 0.0  ;;  %v2759_v12 = vmul.f32 0.2, %v4498_v48  ;;  %v2819_v49 = vsel %vm2691_vm4, %v4496_v45, %v2755_v29  ;;  %v6929_v45 = vrot.slane %v2937_v58, %v319_v43 }
 0x224   :  { %vm2696_vm7 = vcmp.gt.f32.partialorder %v4499_v60, 0.0  ;;  %v2760_v0 = vmul.f32 0.2, %v4499_v60  ;;  %v2820_v62 = vsel %vm2692_vm5, %v4497_v21, %v2756_v39  ;;  %v6933_v28 = vrot.slane %v2937_v58, %v323_v47 }
 0x225   :  { %v2823_v31 = vsel %vm2695_vm6, %v4498_v48, %v2759_v12 }
 0x226   :  { %v2630_v51 = vpop.f32.mrb[56].mxu1  ;;  %v2824_v40 = vsel %vm2696_vm7, %v4499_v60, %v2760_v0  ;;  %v2863_v6 = vpack.c.bf16 %v2823_v31, %v2819_v49 }
 0x227   :  { %v4500_v53 = vadd.f32 %v2630_v51, %v6860_v50  ;;  %v2632_v8 = vpop.f32.mrb[57].mxu1  ;;  %v2864_v63 = vpack.c.bf16 %v2824_v40, %v2820_v62 }
 0x228   :  { %v4501_v57 = vadd.f32 %v2632_v8, %v6863_v61  ;;  %v2634_v59 = vpop.f32.mrb[58].mxu1 }
 0x229   :  { %v2763_v13 = vmul.f32 0.2, %v4500_v53  ;;  %v4502_v2 = vadd.f32 %v2634_v59, %v6860_v50  ;;  %v2636_v4 = vpop.f32.mrb[59].mxu1  ;;  %3464 = vmatprep.mubr.bf16.mxu0 %v2864_v63  ;;  %vm2699_vm8 = vcmp.gt.f32.partialorder %v4500_v53, 0.0 }
 0x22a   :  { %v2764_v54 = vmul.f32 0.2, %v4501_v57  ;;  %v4503_v23 = vadd.f32 %v2636_v4, %v6863_v61  ;;  %3465 = vmatmul.mubr.bf16.gmra.mrb[52].mxu0 %v2863_v6  ;;  %vm2700_vm9 = vcmp.gt.f32.partialorder %v4501_v57, 0.0 }
 0x22b   :  { %vm2703_vm10 = vcmp.gt.f32.partialorder %v4502_v2, 0.0  ;;  %v2767_v35 = vmul.f32 0.2, %v4502_v2  ;;  %v2827_v9 = vsel %vm2699_vm8, %v4500_v53, %v2763_v13 }
 0x22c   :  { %vm2704_vm11 = vcmp.gt.f32.partialorder %v4503_v23, 0.0  ;;  %v2768_v36 = vmul.f32 0.2, %v4503_v23  ;;  %v2828_v11 = vsel %vm2700_vm9, %v4501_v57, %v2764_v54 }
 0x22d   :  { %v2831_v10 = vsel %vm2703_vm10, %v4502_v2, %v2767_v35 }
 0x22e   :  { %v2640_v55 = vpop.f32.mrb[60].mxu1  ;;  %v2832_v56 = vsel %vm2704_vm11, %v4503_v23, %v2768_v36  ;;  %v2867_v24 = vpack.c.bf16 %v2831_v10, %v2827_v9 }
 0x22f   :  { %v4504_v14 = vadd.f32 %v2640_v55, %v6860_v50  ;;  %v2642_v52 = vpop.f32.mrb[61].mxu1  ;;  %v2868_v46 = vpack.c.bf16 %v2832_v56, %v2828_v11 }
 0x230   :  { %v4505_v15 = vadd.f32 %v2642_v52, %v6863_v61  ;;  %v2644_v17 = vpop.f32.mrb[62].mxu1 }
 0x231   :  { %v2771_v26 = vmul.f32 0.2, %v4504_v14  ;;  %v4506_v3 = vadd.f32 %v2644_v17, %v6860_v50  ;;  %v2646_v19 = vpop.f32.mrb[63].mxu1  ;;  %3474 = vmatprep.mubr.bf16.mxu0 %v2868_v46  ;;  %vm2707_vm12 = vcmp.gt.f32.partialorder %v4504_v14, 0.0  ;;  %v5255_v50 = vld [vmem:[%s7040_s5 + $0x68] sm:$0xff]  }
 0x232   :  { %v2772_v22 = vmul.f32 0.2, %v4505_v15  ;;  %v4507_v5 = vadd.f32 %v2646_v19, %v6863_v61  ;;  %3475 = vmatmul.mubr.bf16.gmra.mrb[56].mxu0 %v2867_v24  ;;  %vm2708_vm13 = vcmp.gt.f32.partialorder %v4505_v15, 0.0  ;;  %v5256_v61 = vld [vmem:[%s7040_s5 + $0x28] sm:$0xff]   ;;  %4342 = vmatprep.subr.bf16.mxu0 %v5255_v50 }
 0x233   :  { %vm2711_vm14 = vcmp.gt.f32.partialorder %v4506_v3, 0.0  ;;  %v2775_v27 = vmul.f32 0.2, %v4506_v3  ;;  %v2835_v42 = vsel %vm2707_vm12, %v4504_v14, %v2771_v26  ;;  %4401 = vmatprep.subr.bf16.mxu1 %v5255_v50  ;;  %4343 = vmatpush3.bf16.msra.mxu0 %v5256_v61 }
 0x234   :  { %vm2712_vm15 = vcmp.gt.f32.partialorder %v4507_v5, 0.0  ;;  %v2776_v32 = vmul.f32 0.2, %v4507_v5  ;;  %v2836_v7 = vsel %vm2708_vm13, %v4505_v15, %v2772_v22  ;;  %4409 = vmatpush3.bf16.msra.mxu1 %v5256_v61  ;;  %4344 = vmatprep.subr.bf16.mxu0 %v5257_v18 }
 0x235   :  { %v2839_v25 = vsel %vm2711_vm14, %v4506_v3, %v2775_v27  ;;  %4402 = vmatprep.subr.bf16.mxu1 %v5257_v18 }
 0x236   :  { %v2840_v33 = vsel %vm2712_vm15, %v4507_v5, %v2776_v32  ;;  %v2871_v16 = vpack.c.bf16 %v2839_v25, %v2835_v42 }
 0x237   :  { %v2872_v34 = vpack.c.bf16 %v2840_v33, %v2836_v7  ;;  %4345 = vmatpush3.bf16.msra.mxu0 %v5258_v44 }
 0x238   :  { %4410 = vmatpush3.bf16.msra.mxu1 %v5258_v44  ;;  %4346 = vmatprep.subr.bf16.mxu0 %v5259_v20 }
 0x239   :  { %3484 = vmatprep.mubr.bf16.mxu0 %v2872_v34  ;;  %4403 = vmatprep.subr.bf16.mxu1 %v5259_v20 }
 0x23a   :  { %3485 = vmatmul.mubr.bf16.gmra.mrb[60].mxu0 %v2871_v16 }
 0x23b   :  { %4347 = vmatpush3.bf16.msra.mxu0 %v5260_v37 }
 0x23c   :  { %4411 = vmatpush3.bf16.msra.mxu1 %v5260_v37 }
 0x2d5   :  { %v3416_v1 = vpop.f32.mrb[32].mxu0 }
 0x2d6   :  { %v4508_v21 = vadd.f32 %v3416_v1, %v6929_v45  ;;  %v3418_v38 = vpop.f32.mrb[33].mxu0 }
 0x2d7   :  { %v4509_v29 = vadd.f32 %v3418_v38, %v6933_v28  ;;  %v3420_v48 = vpop.f32.mrb[34].mxu0 }
 0x2d8   :  { %v3527_v30 = vmul.f32 0.2, %v4508_v21  ;;  %v4510_v39 = vadd.f32 %v3420_v48, %v6929_v45  ;;  %v3422_v60 = vpop.f32.mrb[35].mxu0  ;;  %vm3495_vm0 = vcmp.gt.f32.partialorder %v4508_v21, 0.0 }
 0x2d9   :  { %v3528_v12 = vmul.f32 0.2, %v4509_v29  ;;  %v4511_v43 = vadd.f32 %v3422_v60, %v6933_v28  ;;  %vm3496_vm1 = vcmp.gt.f32.partialorder %v4509_v29, 0.0 }
 0x2da   :  { %vm3497_vm2 = vcmp.gt.f32.partialorder %v4510_v39, 0.0  ;;  %v3529_v41 = vmul.f32 0.2, %v4510_v39  ;;  %v3559_v0 = vsel %vm3495_vm0, %v4508_v21, %v3527_v30 }
 0x2db   :  { %vm3498_vm3 = vcmp.gt.f32.partialorder %v4511_v43, 0.0  ;;  %v3530_v47 = vmul.f32 0.2, %v4511_v43  ;;  %v3560_v62 = vsel %vm3496_vm1, %v4509_v29, %v3528_v12 }
 0x2dc   :  { %v3561_v49 = vsel %vm3497_vm2, %v4510_v39, %v3529_v41 }
 0x2dd   :  { %v3591_v31 = vpack.c.bf16 %v3561_v49, %v3559_v0  ;;  %v3426_v51 = vpop.f32.mrb[36].mxu0  ;;  %v3562_v40 = vsel %vm3498_vm3, %v4511_v43, %v3530_v47 }
 0x2de   :  { %v4512_v6 = vadd.f32 %v3426_v51, %v6929_v45  ;;  %v3428_v53 = vpop.f32.mrb[37].mxu0  ;;  %v3592_v8 = vpack.c.bf16 %v3562_v40, %v3560_v62 }
 0x2df   :  { %v4513_v63 = vadd.f32 %v3428_v53, %v6933_v28  ;;  %v3430_v57 = vpop.f32.mrb[38].mxu0 }
 0x2e0   :  { %v3531_v59 = vmul.f32 0.2, %v4512_v6  ;;  %v4514_v13 = vadd.f32 %v3430_v57, %v6929_v45  ;;  %v3432_v2 = vpop.f32.mrb[39].mxu0  ;;  %3774 = vmatprep.mubr.bf16.mxu0 %v3592_v8  ;;  %vm3499_vm4 = vcmp.gt.f32.partialorder %v4512_v6, 0.0 }
 0x2e1   :  { %v3532_v4 = vmul.f32 0.2, %v4513_v63  ;;  %v4515_v54 = vadd.f32 %v3432_v2, %v6933_v28  ;;  %3775 = vmatmul.mubr.bf16.vlgmr.msra.gmra.mrb[64].mxu0 %v3591_v31  ;;  %vm3500_vm5 = vcmp.gt.f32.partialorder %v4513_v63, 0.0 }
 0x2e2   :  { %vm3501_vm6 = vcmp.gt.f32.partialorder %v4514_v13, 0.0  ;;  %v3533_v23 = vmul.f32 0.2, %v4514_v13  ;;  %v3563_v36 = vsel %vm3499_vm4, %v4512_v6, %v3531_v59 }
 0x2e3   :  { %vm3502_vm7 = vcmp.gt.f32.partialorder %v4515_v54, 0.0  ;;  %v3534_v35 = vmul.f32 0.2, %v4515_v54  ;;  %v3564_v55 = vsel %vm3500_vm5, %v4513_v63, %v3532_v4 }
 0x2e4   :  { %v3565_v9 = vsel %vm3501_vm6, %v4514_v13, %v3533_v23 }
 0x2e5   :  { %v3436_v10 = vpop.f32.mrb[40].mxu0  ;;  %v3566_v11 = vsel %vm3502_vm7, %v4515_v54, %v3534_v35  ;;  %v3593_v56 = vpack.c.bf16 %v3565_v9, %v3563_v36 }
 0x2e6   :  { %v4516_v24 = vadd.f32 %v3436_v10, %v6929_v45  ;;  %v3438_v14 = vpop.f32.mrb[41].mxu0  ;;  %v3594_v52 = vpack.c.bf16 %v3566_v11, %v3564_v55 }
 0x2e7   :  { %v4517_v46 = vadd.f32 %v3438_v14, %v6933_v28  ;;  %v3440_v15 = vpop.f32.mrb[42].mxu0 }
 0x2e8   :  { %v3535_v17 = vmul.f32 0.2, %v4516_v24  ;;  %v4518_v26 = vadd.f32 %v3440_v15, %v6929_v45  ;;  %v3442_v3 = vpop.f32.mrb[43].mxu0  ;;  %3782 = vmatprep.mubr.bf16.mxu0 %v3594_v52  ;;  %vm3503_vm8 = vcmp.gt.f32.partialorder %v4516_v24, 0.0 }
 0x2e9   :  { %v3536_v19 = vmul.f32 0.2, %v4517_v46  ;;  %v4519_v22 = vadd.f32 %v3442_v3, %v6933_v28  ;;  %3783 = vmatmul.mubr.bf16.gmra.mrb[68].mxu0 %v3593_v56  ;;  %vm3504_vm9 = vcmp.gt.f32.partialorder %v4517_v46, 0.0 }
 0x2ea   :  { %vm3505_vm10 = vcmp.gt.f32.partialorder %v4518_v26, 0.0  ;;  %v3537_v5 = vmul.f32 0.2, %v4518_v26  ;;  %v3567_v32 = vsel %vm3503_vm8, %v4516_v24, %v3535_v17 }
 0x2eb   :  { %vm3506_vm11 = vcmp.gt.f32.partialorder %v4519_v22, 0.0  ;;  %v3538_v27 = vmul.f32 0.2, %v4519_v22  ;;  %v3568_v33 = vsel %vm3504_vm9, %v4517_v46, %v3536_v19 }
 0x2ec   :  { %v3569_v42 = vsel %vm3505_vm10, %v4518_v26, %v3537_v5 }
 0x2ed   :  { %v3595_v25 = vpack.c.bf16 %v3569_v42, %v3567_v32  ;;  %v3446_v7 = vpop.f32.mrb[44].mxu0  ;;  %v3570_v16 = vsel %vm3506_vm11, %v4519_v22, %v3538_v27 }
 0x2ee   :  { %v4520_v34 = vadd.f32 %v3446_v7, %v6929_v45  ;;  %v3448_v50 = vpop.f32.mrb[45].mxu0  ;;  %v3596_v61 = vpack.c.bf16 %v3570_v16, %v3568_v33 }
 0x2ef   :  { %v4521_v18 = vadd.f32 %v3448_v50, %v6933_v28  ;;  %v3450_v44 = vpop.f32.mrb[46].mxu0 }
 0x2f0   :  { %v3539_v20 = vmul.f32 0.2, %v4520_v34  ;;  %v4522_v37 = vadd.f32 %v3450_v44, %v6929_v45  ;;  %v3452_v58 = vpop.f32.mrb[47].mxu0  ;;  %3790 = vmatprep.mubr.bf16.mxu1 %v3596_v61  ;;  %vm3507_vm12 = vcmp.gt.f32.partialorder %v4520_v34, 0.0 }
 0x2f1   :  { %v3540_v1 = vmul.f32 0.2, %v4521_v18  ;;  %v4523_v21 = vadd.f32 %v3452_v58, %v6933_v28  ;;  %3791 = vmatmul.mubr.bf16.vlgmr.msra.gmra.mrb[64].mxu1 %v3595_v25  ;;  %vm3508_vm13 = vcmp.gt.f32.partialorder %v4521_v18, 0.0 }
 0x2f2   :  { %vm3509_vm14 = vcmp.gt.f32.partialorder %v4522_v37, 0.0  ;;  %v3541_v38 = vmul.f32 0.2, %v4522_v37  ;;  %v3571_v48 = vsel %vm3507_vm12, %v4520_v34, %v3539_v20 }
 0x2f3   :  { %vm3510_vm15 = vcmp.gt.f32.partialorder %v4523_v21, 0.0  ;;  %v3542_v29 = vmul.f32 0.2, %v4523_v21  ;;  %v3572_v60 = vsel %vm3508_vm13, %v4521_v18, %v3540_v1 }
 0x2f4   :  { %v3573_v30 = vsel %vm3509_vm14, %v4522_v37, %v3541_v38 }
 0x2f5   :  { %v3456_v39 = vpop.f32.mrb[48].mxu0  ;;  %v3574_v12 = vsel %vm3510_vm15, %v4523_v21, %v3542_v29  ;;  %v3597_v43 = vpack.c.bf16 %v3573_v30, %v3571_v48 }
 0x2f6   :  { %v4524_v41 = vadd.f32 %v3456_v39, %v6929_v45  ;;  %v3458_v47 = vpop.f32.mrb[49].mxu0  ;;  %v3598_v0 = vpack.c.bf16 %v3574_v12, %v3572_v60 }
 0x2f7   :  { %v4525_v49 = vadd.f32 %v3458_v47, %v6933_v28  ;;  %v3460_v31 = vpop.f32.mrb[50].mxu0 }
 0x2f8   :  { %v3543_v51 = vmul.f32 0.2, %v4524_v41  ;;  %v4526_v62 = vadd.f32 %v3460_v31, %v6929_v45  ;;  %v3462_v40 = vpop.f32.mrb[51].mxu0  ;;  %3798 = vmatprep.mubr.bf16.mxu1 %v3598_v0  ;;  %vm3511_vm0 = vcmp.gt.f32.partialorder %v4524_v41, 0.0 }
 0x2f9   :  { %v3544_v6 = vmul.f32 0.2, %v4525_v49  ;;  %v4527_v53 = vadd.f32 %v3462_v40, %v6933_v28  ;;  %3799 = vmatmul.mubr.bf16.gmra.mrb[68].mxu1 %v3597_v43  ;;  %vm3512_vm1 = vcmp.gt.f32.partialorder %v4525_v49, 0.0 }
 0x2fa   :  { %vm3513_vm2 = vcmp.gt.f32.partialorder %v4526_v62, 0.0  ;;  %v3545_v8 = vmul.f32 0.2, %v4526_v62  ;;  %v3575_v57 = vsel %vm3511_vm0, %v4524_v41, %v3543_v51 }
 0x2fb   :  { %vm3514_vm3 = vcmp.gt.f32.partialorder %v4527_v53, 0.0  ;;  %v3546_v63 = vmul.f32 0.2, %v4527_v53  ;;  %v3576_v2 = vsel %vm3512_vm1, %v4525_v49, %v3544_v6 }
 0x2fc   :  { %v3577_v59 = vsel %vm3513_vm2, %v4526_v62, %v3545_v8  ;;  %v6970_v8 = vld [vmem:[%s7042_s6] ss:$0 sm:$0xff] }
 0x2fd   :  { %v3466_v13 = vpop.f32.mrb[52].mxu0  ;;  %v3578_v4 = vsel %vm3514_vm3, %v4527_v53, %v3546_v63  ;;  %v3599_v54 = vpack.c.bf16 %v3577_v59, %v3575_v57 }
 0x2fe   :  { %v4528_v23 = vadd.f32 %v3466_v13, %v6929_v45  ;;  %v3468_v35 = vpop.f32.mrb[53].mxu0  ;;  %v3600_v36 = vpack.c.bf16 %v3578_v4, %v3576_v2 }
 0x2ff   :  { %v4529_v9 = vadd.f32 %v3468_v35, %v6933_v28  ;;  %v3470_v10 = vpop.f32.mrb[54].mxu0 }
 0x300   :  { %v3547_v55 = vmul.f32 0.2, %v4528_v23  ;;  %v4530_v11 = vadd.f32 %v3470_v10, %v6929_v45  ;;  %v3472_v56 = vpop.f32.mrb[55].mxu0  ;;  %3806 = vmatprep.mubr.bf16.mxu1 %v3600_v36  ;;  %vm3515_vm4 = vcmp.gt.f32.partialorder %v4528_v23, 0.0 }
 0x301   :  { %v3548_v24 = vmul.f32 0.2, %v4529_v9  ;;  %v4531_v14 = vadd.f32 %v3472_v56, %v6933_v28  ;;  %3807 = vmatmul.mubr.bf16.gmra.mrb[72].mxu1 %v3599_v54  ;;  %vm3516_vm5 = vcmp.gt.f32.partialorder %v4529_v9, 0.0 }
 0x302   :  { %vm3517_vm6 = vcmp.gt.f32.partialorder %v4530_v11, 0.0  ;;  %v3549_v52 = vmul.f32 0.2, %v4530_v11  ;;  %v3579_v15 = vsel %vm3515_vm4, %v4528_v23, %v3547_v55 }
 0x303   :  { %vm3518_vm7 = vcmp.gt.f32.partialorder %v4531_v14, 0.0  ;;  %v3550_v46 = vmul.f32 0.2, %v4531_v14  ;;  %v3580_v3 = vsel %vm3516_vm5, %v4529_v9, %v3548_v24 }
 0x304   :  { %v3581_v17 = vsel %vm3517_vm6, %v4530_v11, %v3549_v52 }
 0x305   :  { %v3476_v26 = vpop.f32.mrb[56].mxu0  ;;  %v3582_v19 = vsel %vm3518_vm7, %v4531_v14, %v3550_v46  ;;  %v3601_v22 = vpack.c.bf16 %v3581_v17, %v3579_v15 }
 0x306   :  { %v4532_v5 = vadd.f32 %v3476_v26, %v6929_v45  ;;  %v3478_v27 = vpop.f32.mrb[57].mxu0  ;;  %v3602_v32 = vpack.c.bf16 %v3582_v19, %v3580_v3 }
 0x307   :  { %v4533_v42 = vadd.f32 %v3478_v27, %v6933_v28  ;;  %v3480_v25 = vpop.f32.mrb[58].mxu0 }
 0x308   :  { %v3551_v7 = vmul.f32 0.2, %v4532_v5  ;;  %v4534_v33 = vadd.f32 %v3480_v25, %v6929_v45  ;;  %v3482_v16 = vpop.f32.mrb[59].mxu0  ;;  %3814 = vmatprep.mubr.bf16.mxu1 %v3602_v32  ;;  %vm3519_vm8 = vcmp.gt.f32.partialorder %v4532_v5, 0.0 }
 0x309   :  { %v3552_v34 = vmul.f32 0.2, %v4533_v42  ;;  %v4535_v50 = vadd.f32 %v3482_v16, %v6933_v28  ;;  %3815 = vmatmul.mubr.bf16.gmra.mrb[76].mxu1 %v3601_v22  ;;  %vm3520_vm9 = vcmp.gt.f32.partialorder %v4533_v42, 0.0 }
 0x30a   :  { %vm3521_vm10 = vcmp.gt.f32.partialorder %v4534_v33, 0.0  ;;  %v3553_v61 = vmul.f32 0.2, %v4534_v33  ;;  %v3583_v44 = vsel %vm3519_vm8, %v4532_v5, %v3551_v7 }
 0x30b   :  { %vm3522_vm11 = vcmp.gt.f32.partialorder %v4535_v50, 0.0  ;;  %v3554_v18 = vmul.f32 0.2, %v4535_v50  ;;  %v3584_v58 = vsel %vm3520_vm9, %v4533_v42, %v3552_v34 }
 0x30c   :  { %v3585_v20 = vsel %vm3521_vm10, %v4534_v33, %v3553_v61 }
 0x30d   :  { %v3486_v37 = vpop.f32.mrb[60].mxu0  ;;  %v3586_v1 = vsel %vm3522_vm11, %v4535_v50, %v3554_v18  ;;  %v3603_v21 = vpack.c.bf16 %v3585_v20, %v3583_v44 }
 0x30e   :  { %v4536_v38 = vadd.f32 %v3486_v37, %v6929_v45  ;;  %v3488_v29 = vpop.f32.mrb[61].mxu0  ;;  %v3604_v48 = vpack.c.bf16 %v3586_v1, %v3584_v58 }
 0x30f   :  { %v4537_v30 = vadd.f32 %v3488_v29, %v6933_v28  ;;  %v3490_v39 = vpop.f32.mrb[62].mxu0 }
 0x310   :  { %v3555_v60 = vmul.f32 0.2, %v4536_v38  ;;  %v4538_v12 = vadd.f32 %v3490_v39, %v6929_v45  ;;  %v3492_v43 = vpop.f32.mrb[63].mxu0  ;;  %3822 = vmatprep.mubr.bf16.mxu1 %v3604_v48  ;;  %vm3523_vm12 = vcmp.gt.f32.partialorder %v4536_v38, 0.0 }
 0x311   :  { %v3556_v41 = vmul.f32 0.2, %v4537_v30  ;;  %v4539_v47 = vadd.f32 %v3492_v43, %v6933_v28  ;;  %3823 = vmatmul.mubr.bf16.gmra.mrb[80].mxu1 %v3603_v21  ;;  %vm3524_vm13 = vcmp.gt.f32.partialorder %v4537_v30, 0.0 }
 0x312   :  { %vm3525_vm14 = vcmp.gt.f32.partialorder %v4538_v12, 0.0  ;;  %v3557_v0 = vmul.f32 0.2, %v4538_v12  ;;  %v3587_v31 = vsel %vm3523_vm12, %v4536_v38, %v3555_v60 }
 0x313   :  { %vm3526_vm15 = vcmp.gt.f32.partialorder %v4539_v47, 0.0  ;;  %v3558_v49 = vmul.f32 0.2, %v4539_v47  ;;  %v3588_v62 = vsel %vm3524_vm13, %v4537_v30, %v3556_v41 }
 0x314   :  { %v3589_v51 = vsel %vm3525_vm14, %v4538_v12, %v3557_v0 }
 0x315   :  { %v3590_v40 = vsel %vm3526_vm15, %v4539_v47, %v3558_v49  ;;  %v3605_v6 = vpack.c.bf16 %v3589_v51, %v3587_v31 }
 0x316   :  { %v3606_v53 = vpack.c.bf16 %v3590_v40, %v3588_v62 }
 0x318   :  { %3830 = vmatprep.mubr.bf16.mxu1 %v3606_v53 }
 0x319   :  { %3831 = vmatmul.mubr.bf16.gmra.mrb[84].mxu1 %v3605_v6 }
 0x3b4   :  { %v4348_v45 = vpop.f32.mrb[64].mxu0 }
 0x3b5   :  { %v4349_v28 = vpop.f32.mrb[65].mxu0 }
 0x3b6   :  { %v4350_v63 = vadd.f32 %v4349_v28, %v4348_v45  ;;  %v4351_v57 = vpop.f32.mrb[66].mxu0 }
 0x3b7   :  { %v4352_v59 = vpop.f32.mrb[67].mxu0 }
 0x3b8   :  { %v3777_v13 = vadd.f32 %v4350_v63, %v6970_v8  ;;  %v4353_v2 = vadd.f32 %v4352_v59, %v4351_v57 }
 0x3ba   :  { %v4316_v4 = vmul.f32 -1.442695, %v3777_v13  ;;  %v3780_v54 = vadd.f32 %v4353_v2, %v6970_v8 }
 0x3bc   :  { %5261 = vpow2.f32 %v4316_v4  ;;  %v4317_v23 = vmul.f32 -1.442695, %v3780_v54  ;;  %v4354_v35 = vpop.f32.mrb[68].mxu0 }
 0x3bd   :  { %v4355_v36 = vpop.f32.mrb[69].mxu0 }
 0x3be   :  { %5263 = vpow2.f32 %v4317_v23  ;;  %v4356_v9 = vadd.f32 %v4355_v36, %v4354_v35  ;;  %v4357_v10 = vpop.f32.mrb[70].mxu0 }
 0x3bf   :  { %v4358_v55 = vpop.f32.mrb[71].mxu0 }
 0x3c0   :  { %v3785_v11 = vadd.f32 %v4356_v9, %v6970_v8  ;;  %v4359_v56 = vadd.f32 %v4358_v55, %v4357_v10 }
 0x3c2   :  { %v4318_v24 = vmul.f32 -1.442695, %v3785_v11  ;;  %v3788_v14 = vadd.f32 %v4359_v56, %v6970_v8 }
 0x3c4   :  { %5265 = vpow2.f32 %v4318_v24  ;;  %v4319_v52 = vmul.f32 -1.442695, %v3788_v14  ;;  %v4360_v46 = vpop.f32.mrb[64].mxu1 }
 0x3c5   :  { %v4361_v15 = vpop.f32.mrb[65].mxu1 }
 0x3c6   :  { %v5262_v17 = vpop.eup %5261  ;;  %5267 = vpow2.f32 %v4319_v52  ;;  %v4362_v26 = vadd.f32 %v4361_v15, %v4360_v46  ;;  %v4363_v3 = vpop.f32.mrb[66].mxu1 }
 0x3c7   :  { %v3887_v19 = vadd.f32 1.0, %v5262_v17  ;;  %v4364_v22 = vpop.f32.mrb[67].mxu1 }
 0x3c8   :  { %v5264_v5 = vpop.eup %5263  ;;  %v3793_v27 = vadd.f32 %v4362_v26, %v6970_v8  ;;  %v4365_v32 = vadd.f32 %v4364_v22, %v4363_v3 }
 0x3c9   :  { %5269 = vrcp.f32 %v3887_v19  ;;  %v3888_v42 = vadd.f32 1.0, %v5264_v5 }
 0x3ca   :  { %v4320_v25 = vmul.f32 -1.442695, %v3793_v27  ;;  %v3796_v7 = vadd.f32 %v4365_v32, %v6970_v8 }
 0x3cb   :  { %5271 = vrcp.f32 %v3888_v42 }
 0x3cc   :  { %5273 = vpow2.f32 %v4320_v25  ;;  %v4321_v33 = vmul.f32 -1.442695, %v3796_v7  ;;  %v4366_v16 = vpop.f32.mrb[68].mxu1 }
 0x3cd   :  { %v4367_v34 = vpop.f32.mrb[69].mxu1 }
 0x3ce   :  { %v5266_v50 = vpop.eup %5265  ;;  %5275 = vpow2.f32 %v4321_v33  ;;  %v4368_v61 = vadd.f32 %v4367_v34, %v4366_v16  ;;  %v4369_v18 = vpop.f32.mrb[70].mxu1 }
 0x3cf   :  { %v3889_v44 = vadd.f32 1.0, %v5266_v50  ;;  %v4370_v20 = vpop.f32.mrb[71].mxu1 }
 0x3d0   :  { %v5268_v37 = vpop.eup %5267  ;;  %v3801_v58 = vadd.f32 %v4368_v61, %v6970_v8  ;;  %v4371_v1 = vadd.f32 %v4370_v20, %v4369_v18 }
 0x3d1   :  { %5277 = vrcp.f32 %v3889_v44  ;;  %v3890_v21 = vadd.f32 1.0, %v5268_v37 }
 0x3d2   :  { %v4322_v38 = vmul.f32 -1.442695, %v3801_v58  ;;  %v3804_v29 = vadd.f32 %v4371_v1, %v6970_v8 }
 0x3d3   :  { %v5270_v48 = vpop.eup %5269  ;;  %5279 = vrcp.f32 %v3890_v21 }
 0x3d4   :  { %3935 = vst [vmem:[%s7043_s7] sm:$0xff] %v5270_v48  ;;  %5281 = vpow2.f32 %v4322_v38  ;;  %v4323_v30 = vmul.f32 -1.442695, %v3804_v29  ;;  %v4372_v39 = vpop.f32.mrb[72].mxu1 }
 0x3d5   :  { %v5272_v60 = vpop.eup %5271  ;;  %v4373_v12 = vpop.f32.mrb[73].mxu1 }
 0x3d6   :  { %v5274_v43 = vpop.eup %5273  ;;  %3936 = vst [vmem:[%s7043_s7 + $0x8] sm:$0xff] %v5272_v60  ;;  %5283 = vpow2.f32 %v4323_v30  ;;  %v4374_v41 = vadd.f32 %v4373_v12, %v4372_v39  ;;  %v4375_v47 = vpop.f32.mrb[74].mxu1 }
 0x3d7   :  { %v3891_v0 = vadd.f32 1.0, %v5274_v43  ;;  %v4376_v49 = vpop.f32.mrb[75].mxu1 }
 0x3d8   :  { %v5276_v31 = vpop.eup %5275  ;;  %v3809_v51 = vadd.f32 %v4374_v41, %v6970_v8  ;;  %v4377_v62 = vadd.f32 %v4376_v49, %v4375_v47 }
 0x3d9   :  { %5285 = vrcp.f32 %v3891_v0  ;;  %v3892_v40 = vadd.f32 1.0, %v5276_v31 }
 0x3da   :  { %v4324_v6 = vmul.f32 -1.442695, %v3809_v51  ;;  %v3812_v53 = vadd.f32 %v4377_v62, %v6970_v8 }
 0x3db   :  { %v5278_v45 = vpop.eup %5277  ;;  %5287 = vrcp.f32 %v3892_v40 }
 0x3dc   :  { %3937 = vst [vmem:[%s7043_s7 + $0x10] sm:$0xff] %v5278_v45  ;;  %5289 = vpow2.f32 %v4324_v6  ;;  %v4325_v28 = vmul.f32 -1.442695, %v3812_v53  ;;  %v4378_v63 = vpop.f32.mrb[76].mxu1 }
 0x3dd   :  { %v5280_v57 = vpop.eup %5279  ;;  %v4379_v59 = vpop.f32.mrb[77].mxu1 }
 0x3de   :  { %v5282_v13 = vpop.eup %5281  ;;  %3938 = vst [vmem:[%s7043_s7 + $0x18] sm:$0xff] %v5280_v57  ;;  %5291 = vpow2.f32 %v4325_v28  ;;  %v4380_v2 = vadd.f32 %v4379_v59, %v4378_v63  ;;  %v4381_v4 = vpop.f32.mrb[78].mxu1 }
 0x3df   :  { %v3893_v54 = vadd.f32 1.0, %v5282_v13  ;;  %v4382_v23 = vpop.f32.mrb[79].mxu1 }
 0x3e0   :  { %v5284_v35 = vpop.eup %5283  ;;  %v3817_v36 = vadd.f32 %v4380_v2, %v6970_v8  ;;  %v4383_v9 = vadd.f32 %v4382_v23, %v4381_v4 }
 0x3e1   :  { %5293 = vrcp.f32 %v3893_v54  ;;  %v3894_v10 = vadd.f32 1.0, %v5284_v35 }
 0x3e2   :  { %v4326_v55 = vmul.f32 -1.442695, %v3817_v36  ;;  %v3820_v11 = vadd.f32 %v4383_v9, %v6970_v8 }
 0x3e3   :  { %v5286_v56 = vpop.eup %5285  ;;  %5295 = vrcp.f32 %v3894_v10 }
 0x3e4   :  { %3939 = vst [vmem:[%s7043_s7 + $0x20] sm:$0xff] %v5286_v56  ;;  %5297 = vpow2.f32 %v4326_v55  ;;  %v4327_v24 = vmul.f32 -1.442695, %v3820_v11  ;;  %v4384_v14 = vpop.f32.mrb[80].mxu1 }
 0x3e5   :  { %v5288_v52 = vpop.eup %5287  ;;  %v4385_v46 = vpop.f32.mrb[81].mxu1 }
 0x3e6   :  { %v5290_v15 = vpop.eup %5289  ;;  %3940 = vst [vmem:[%s7043_s7 + $0x28] sm:$0xff] %v5288_v52  ;;  %5299 = vpow2.f32 %v4327_v24  ;;  %v4386_v17 = vadd.f32 %v4385_v46, %v4384_v14  ;;  %v4387_v26 = vpop.f32.mrb[82].mxu1 }
 0x3e7   :  { %v3895_v3 = vadd.f32 1.0, %v5290_v15  ;;  %v4388_v19 = vpop.f32.mrb[83].mxu1 }
 0x3e8   :  { %v5292_v22 = vpop.eup %5291  ;;  %v3825_v5 = vadd.f32 %v4386_v17, %v6970_v8  ;;  %v4389_v27 = vadd.f32 %v4388_v19, %v4387_v26 }
 0x3e9   :  { %5301 = vrcp.f32 %v3895_v3  ;;  %v3896_v32 = vadd.f32 1.0, %v5292_v22 }
 0x3ea   :  { %v4328_v42 = vmul.f32 -1.442695, %v3825_v5  ;;  %v3828_v25 = vadd.f32 %v4389_v27, %v6970_v8 }
 0x3eb   :  { %v5294_v7 = vpop.eup %5293  ;;  %5303 = vrcp.f32 %v3896_v32 }
 0x3ec   :  { %3941 = vst [vmem:[%s7043_s7 + $0x30] sm:$0xff] %v5294_v7  ;;  %5305 = vpow2.f32 %v4328_v42  ;;  %v4329_v33 = vmul.f32 -1.442695, %v3828_v25  ;;  %v4390_v16 = vpop.f32.mrb[84].mxu1 }
 0x3ed   :  { %v5296_v34 = vpop.eup %5295  ;;  %v4391_v50 = vpop.f32.mrb[85].mxu1 }
 0x3ee   :  { %v5298_v61 = vpop.eup %5297  ;;  %3942 = vst [vmem:[%s7043_s7 + $0x38] sm:$0xff] %v5296_v34  ;;  %5307 = vpow2.f32 %v4329_v33  ;;  %v4392_v18 = vadd.f32 %v4391_v50, %v4390_v16  ;;  %v4393_v44 = vpop.f32.mrb[86].mxu1 }
 0x3ef   :  { %v3897_v20 = vadd.f32 1.0, %v5298_v61  ;;  %v4394_v37 = vpop.f32.mrb[87].mxu1 }
 0x3f0   :  { %v5300_v58 = vpop.eup %5299  ;;  %v3833_v1 = vadd.f32 %v4392_v18, %v6970_v8  ;;  %v4395_v21 = vadd.f32 %v4394_v37, %v4393_v44 }
 0x3f1   :  { %5309 = vrcp.f32 %v3897_v20  ;;  %v3898_v38 = vadd.f32 1.0, %v5300_v58 }
 0x3f2   :  { %v4330_v29 = vmul.f32 -1.442695, %v3833_v1  ;;  %v3836_v48 = vadd.f32 %v4395_v21, %v6970_v8 }
 0x3f3   :  { %v5302_v30 = vpop.eup %5301  ;;  %5311 = vrcp.f32 %v3898_v38 }
 0x3f4   :  { %3943 = vst [vmem:[%s7043_s7 + $0x40] sm:$0xff] %v5302_v30  ;;  %5313 = vpow2.f32 %v4330_v29  ;;  %v4331_v39 = vmul.f32 -1.442695, %v3836_v48 }
 0x3f5   :  { %v5304_v60 = vpop.eup %5303 }
 0x3f6   :  { %v5306_v12 = vpop.eup %5305  ;;  %3944 = vst [vmem:[%s7043_s7 + $0x48] sm:$0xff] %v5304_v60  ;;  %5315 = vpow2.f32 %v4331_v39 }
 0x3f7   :  { %v3899_v43 = vadd.f32 1.0, %v5306_v12 }
 0x3f8   :  { %v5308_v41 = vpop.eup %5307 }
 0x3f9   :  { %5317 = vrcp.f32 %v3899_v43  ;;  %v3900_v47 = vadd.f32 1.0, %v5308_v41 }
 0x3fb   :  { %v5310_v8 = vpop.eup %5309  ;;  %5319 = vrcp.f32 %v3900_v47 }
 0x3fc   :  { %3945 = vst [vmem:[%s7043_s7 + $0x50] sm:$0xff] %v5310_v8 }
 0x3fd   :  { %v5312_v0 = vpop.eup %5311 }
 0x3fe   :  { %v5314_v49 = vpop.eup %5313  ;;  %3946 = vst [vmem:[%s7043_s7 + $0x58] sm:$0xff] %v5312_v0 }
 0x3ff   :  { %v3901_v31 = vadd.f32 1.0, %v5314_v49 }
 0x400   :  { %v5316_v51 = vpop.eup %5315 }
 0x401   :  { %5321 = vrcp.f32 %v3901_v31  ;;  %v3902_v62 = vadd.f32 1.0, %v5316_v51 }
 0x403   :  { %v5318_v40 = vpop.eup %5317  ;;  %5323 = vrcp.f32 %v3902_v62 }
 0x404   :  { %3947 = vst [vmem:[%s7043_s7 + $0x60] sm:$0xff] %v5318_v40 }
 0x405   :  { %v5320_v6 = vpop.eup %5319 }
 0x406   :  { %3948 = vst [vmem:[%s7043_s7 + $0x68] sm:$0xff] %v5320_v6 }
 0x40b   :  { %v5322_v53 = vpop.eup %5321 }
 0x40c   :  { %3949 = vst [vmem:[%s7043_s7 + $0x70] sm:$0xff] %v5322_v53 }
 0x40d   :  { %v5324_v45 = vpop.eup %5323 }
 0x40e   :  { %3950 = vst [vmem:[%s7043_s7 + $0x78] sm:$0xff] %v5324_v45 }

</bundles_post_ra>
